<compile_context>
chip_gen: v7x
topology: tpu7x:2x2x1
jax: 0.10.0
libtpu: 0.0.40
codegen_flags: <defaults>
</compile_context>

<pallas_src>
import functools

import jax
import jax.numpy as jnp
from jax.experimental import pallas as pl
from jax.experimental.pallas import tpu as pltpu

LANE = 128


def _round_up(x, m):
    return ((x + m - 1) // m) * m


def _pad_to(x, shape):
    return jnp.pad(x, [(0, s - d) for d, s in zip(x.shape, shape)])


def _choose_tiling(num_verts):
    # 256-wide bf16 adjacency tiles are 128 KiB (256 KiB double-buffered):
    # comfortably inside the scoped-VMEM limit of every TPU generation while
    # big enough to sit near the HBM roofline.  Small graphs use one tile.
    if num_verts <= 512:
        vp = _round_up(num_verts, LANE)
        return vp, vp
    return _round_up(num_verts, 256), 256


# ----------------------------- Pallas kernels ------------------------------

def proj_kernel(x_ref, w_ref, b_ref, h0_ref, h1_ref):
    # H = x @ [W0 | W1] + [b0 | b1]  — one fused MXU matmul for both the
    # self- and neighbor-projection of the GraphConv layer.
    h = jnp.dot(x_ref[...], w_ref[...],
                preferred_element_type=jnp.float32) + b_ref[...]
    d = h0_ref.shape[-1]
    h0_ref[...] = h[:, :d]                          # self term, kept in f32
    h1_ref[...] = h[:, d:].astype(h1_ref.dtype)     # neighbor term -> bf16


def agg_relu_kernel(adj_ref, h0_ref, h1_ref, out_ref, acc_ref):
    # out = relu(H0 + A @ H1), reduction over column tiles of A.
    k = pl.program_id(1)

    @pl.when(k == 0)
    def _():
        acc_ref[...] = h0_ref[...]

    acc_ref[...] += jnp.dot(adj_ref[...], h1_ref[...],
                            preferred_element_type=jnp.float32)

    @pl.when(k == pl.num_programs(1) - 1)
    def _():
        out_ref[...] = jnp.maximum(acc_ref[...], 0.0)


def head_kernel(pool_ref, x_ref, fc1w_ref, fc1b_ref, fc2w_ref, fc2b_ref,
                out_ref, acc_ref):
    # pooled = S @ x (tiled over V), then fc1 / relu / fc2 fused at the end.
    k = pl.program_id(0)

    @pl.when(k == 0)
    def _():
        acc_ref[...] = jnp.zeros_like(acc_ref)

    acc_ref[...] += jnp.dot(pool_ref[...], x_ref[...],
                            preferred_element_type=jnp.float32)

    @pl.when(k == pl.num_programs(0) - 1)
    def _():
        h = jnp.dot(acc_ref[...], fc1w_ref[...],
                    preferred_element_type=jnp.float32) + fc1b_ref[...]
        h = jnp.maximum(h, 0.0)
        out_ref[...] = jnp.dot(h, fc2w_ref[...],
                               preferred_element_type=jnp.float32) + fc2b_ref[...]


# ------------------------------ kernel wrappers -----------------------------

def gconv_relu(x, adj_bf16, wcat, bcat, *, tile):
    """One GraphConv(directed=False) layer + ReLU on padded tensors."""
    vp, din = x.shape
    dout = wcat.shape[1] // 2
    n_row = vp // tile
    n_col = vp // tile

    # (1) fused self/neighbor projection -> H0 (f32), H1 (bf16)
    h0, h1 = pl.pallas_call(
        proj_kernel,
        out_shape=(jax.ShapeDtypeStruct((vp, dout), jnp.float32),
                   jax.ShapeDtypeStruct((vp, dout), jnp.bfloat16)),
        grid_spec=pltpu.PrefetchScalarGridSpec(
            num_scalar_prefetch=0,
            grid=(n_row,),
            in_specs=[pl.BlockSpec((tile, din), lambda i: (i, 0)),
                      pl.BlockSpec((din, 2 * dout), lambda i: (0, 0)),
                      pl.BlockSpec((1, 2 * dout), lambda i: (0, 0))],
            out_specs=(pl.BlockSpec((tile, dout), lambda i: (i, 0)),
                       pl.BlockSpec((tile, dout), lambda i: (i, 0))),
        ),
        compiler_params=pltpu.CompilerParams(
            dimension_semantics=("parallel",)),
    )(x, wcat, bcat)

    # (2) tiled neighbor aggregation + self term + ReLU
    cost = pl.CostEstimate(
        flops=2 * vp * vp * dout + 2 * vp * din * 2 * dout,
        transcendentals=0,
        bytes_accessed=vp * vp * 2 + 3 * vp * dout * 4 + vp * din * 4,
    )
    return pl.pallas_call(
        agg_relu_kernel,
        out_shape=jax.ShapeDtypeStruct((vp, dout), jnp.float32),
        grid_spec=pltpu.PrefetchScalarGridSpec(
            num_scalar_prefetch=0,
            grid=(n_row, n_col),
            in_specs=[pl.BlockSpec((tile, tile), lambda i, k: (i, k)),
                      pl.BlockSpec((tile, dout), lambda i, k: (i, 0)),
                      pl.BlockSpec((tile, dout), lambda i, k: (k, 0))],
            out_specs=pl.BlockSpec((tile, dout), lambda i, k: (i, 0)),
            scratch_shapes=[pltpu.VMEM((tile, dout), jnp.float32)],
        ),
        compiler_params=pltpu.CompilerParams(
            dimension_semantics=("parallel", "arbitrary"),
            vmem_limit_bytes=48 * 1024 * 1024),
        cost_estimate=cost,
    )(adj_bf16, h0, h1)


def mlp_head(x, pool, fc1w, fc1b, fc2w, fc2b, *, tile):
    bp, vp = pool.shape
    dp = x.shape[1]
    hidden = fc1w.shape[1]
    cp = fc2w.shape[1]
    nk = vp // tile
    return pl.pallas_call(
        head_kernel,
        out_shape=jax.ShapeDtypeStruct((bp, cp), jnp.float32),
        grid_spec=pltpu.PrefetchScalarGridSpec(
            num_scalar_prefetch=0,
            grid=(nk,),
            in_specs=[pl.BlockSpec((bp, tile), lambda k: (0, k)),
                      pl.BlockSpec((tile, dp), lambda k: (k, 0)),
                      pl.BlockSpec((dp, hidden), lambda k: (0, 0)),
                      pl.BlockSpec((1, hidden), lambda k: (0, 0)),
                      pl.BlockSpec((hidden, cp), lambda k: (0, 0)),
                      pl.BlockSpec((1, cp), lambda k: (0, 0))],
            out_specs=pl.BlockSpec((bp, cp), lambda k: (0, 0)),
            scratch_shapes=[pltpu.VMEM((bp, dp), jnp.float32)],
        ),
        compiler_params=pltpu.CompilerParams(
            dimension_semantics=("arbitrary",)),
    )(pool, x, fc1w, fc1b, fc2w, fc2b)


# ------------------------------- model glue --------------------------------

def init_params(key, input_dim, hidden_dims, classes):
    dims = [input_dim] + list(hidden_dims)
    params = {"gconvs": []}
    for i in range(len(dims) - 1):
        key, k0, k1 = jax.random.split(key, 3)
        # GraphConv(init='normal'): weight ~ N(0, 0.01), bias = 0, for w0/w1
        params["gconvs"].append(dict(
            w0=0.01 * jax.random.normal(k0, (dims[i], dims[i + 1]), jnp.float32),
            b0=jnp.zeros((1, dims[i + 1]), jnp.float32),
            w1=0.01 * jax.random.normal(k1, (dims[i], dims[i + 1]), jnp.float32),
            b1=jnp.zeros((1, dims[i + 1]), jnp.float32),
        ))
    key, kf1, kf2 = jax.random.split(key, 3)
    params["fc1w"] = 0.01 * jax.random.normal(kf1, (dims[-1], 1024), jnp.float32)
    params["fc1b"] = jnp.zeros((1, 1024), jnp.float32)
    params["fc2w"] = 0.01 * jax.random.normal(kf2, (1024, classes), jnp.float32)
    params["fc2b"] = jnp.zeros((1, classes), jnp.float32)
    return params


def prepare_padded(params, input_dim, hidden_dims, classes):
    """Zero-pad feature/class dims to 128 lanes and fuse W0|W1 per layer."""
    dims = [input_dim] + list(hidden_dims)
    padded = {"gconvs": []}
    for i, layer in enumerate(params["gconvs"]):
        din_p = _round_up(dims[i], LANE)
        dout_p = _round_up(dims[i + 1], LANE)
        w0 = _pad_to(layer["w0"], (din_p, dout_p))
        w1 = _pad_to(layer["w1"], (din_p, dout_p))
        b0 = _pad_to(layer["b0"], (1, dout_p))
        b1 = _pad_to(layer["b1"], (1, dout_p))
        padded["gconvs"].append(dict(
            wcat=jnp.concatenate([w0, w1], axis=1),
            bcat=jnp.concatenate([b0, b1], axis=1)))
    dlast_p = _round_up(dims[-1], LANE)
    cls_p = _round_up(classes, LANE)
    padded["fc1w"] = _pad_to(params["fc1w"], (dlast_p, 1024))
    padded["fc1b"] = params["fc1b"]
    padded["fc2w"] = _pad_to(params["fc2w"], (1024, cls_p))
    padded["fc2b"] = _pad_to(params["fc2b"], (1, cls_p))
    return padded


def build_adjacency(edges, num_verts):
    # undirected: A[i, j] = A[j, i] = 1 for each edge (i, j)
    adj = jnp.zeros((num_verts, num_verts), jnp.float32)
    adj = adj.at[edges[:, 0], edges[:, 1]].set(1.0)
    adj = adj.at[edges[:, 1], edges[:, 0]].set(1.0)
    return adj


def build_pool_matrix(verts_to_mesh_idx, num_meshes):
    # packed_to_list -> list_to_padded -> torch.mean(dim=1) divides every mesh
    # sum by the MAX vertex count across meshes (padded length), not its own.
    counts = jnp.bincount(verts_to_mesh_idx, length=num_meshes)
    max_count = jnp.max(counts).astype(jnp.float32)
    onehot = (verts_to_mesh_idx[None, :] == jnp.arange(num_meshes)[:, None])
    return onehot.astype(jnp.float32) / max_count  # (B, V)


@functools.partial(jax.jit, static_argnames=("num_meshes", "classes"))
def graph_conv_clf_forward(padded_params, verts, adj, pool, *,
                           num_meshes, classes):
    v, din = verts.shape
    vp, tile = _choose_tiling(v)
    din_p = _round_up(din, LANE)
    bp = _round_up(num_meshes, 8)

    x = _pad_to(verts, (vp, din_p))
    # 0/1 adjacency is exactly representable in bf16 -> halves the O(V^2)
    # HBM traffic and uses the fast bf16 MXU path on every generation.
    adj_p = _pad_to(adj, (vp, vp)).astype(jnp.bfloat16)
    pool_p = _pad_to(pool, (bp, vp))

    for layer in padded_params["gconvs"]:
        x = gconv_relu(x, adj_p, layer["wcat"], layer["bcat"], tile=tile)

    out_p = mlp_head(x, pool_p, padded_params["fc1w"], padded_params["fc1b"],
                     padded_params["fc2w"], padded_params["fc2b"], tile=tile)
    return out_p[:num_meshes, :classes]


def reference_forward(params, verts, adj, pool):
    # Pure-JAX reference with the same bf16 casts on the aggregation operands.
    x = verts
    adj_bf16 = adj.astype(jnp.bfloat16)
    for layer in params["gconvs"]:
        h0 = x @ layer["w0"] + layer["b0"]
        h1 = (x @ layer["w1"] + layer["b1"]).astype(jnp.bfloat16)
        nbr = jnp.dot(adj_bf16, h1, preferred_element_type=jnp.float32)
        x = jnp.maximum(h0 + nbr, 0.0)
    pooled = pool @ x
    h = jnp.maximum(pooled @ params["fc1w"] + params["fc1b"], 0.0)
    return h @ params["fc2w"] + params["fc2b"]


# ---------------------------------- main ------------------------------------

if __name__ == "__main__":
    key = jax.random.PRNGKey(0)

    # synthetic "cfg": GCC.INPUT_MESH_FEATS=3, GCC.HIDDEN_DIMS=[32, 64],
    # GCC.CLASSES=10, GCC.CONV_INIT='normal'
    input_dim, hidden_dims, classes = 3, [32, 64], 10

    # synthetic packed mesh batch: 2 meshes with 10 and 6 vertices
    verts_per_mesh = [10, 6]
    num_meshes = len(verts_per_mesh)
    V = sum(verts_per_mesh)

    key, kv = jax.random.split(key)
    verts = jax.random.normal(kv, (V, input_dim), jnp.float32)  # verts_packed()

    # edges_packed(): a chain inside each mesh plus one extra edge per mesh
    edges = []
    off = 0
    for n in verts_per_mesh:
        for i in range(n - 1):
            edges.append((off + i, off + i + 1))
        edges.append((off, off + n - 1))
        off += n
    edges = jnp.asarray(edges, jnp.int32)

    # verts_packed_to_mesh_idx()
    verts_to_mesh_idx = jnp.asarray(
        sum([[m] * n for m, n in enumerate(verts_per_mesh)], []), jnp.int32)

    params = init_params(key, input_dim, hidden_dims, classes)
    padded_params = prepare_padded(params, input_dim, hidden_dims, classes)
    adj = build_adjacency(edges, V)
    pool = build_pool_matrix(verts_to_mesh_idx, num_meshes)

    out = graph_conv_clf_forward(padded_params, verts, adj, pool,
                                 num_meshes=num_meshes, classes=classes)
    out = jax.block_until_ready(out)

    ref = reference_forward(params, verts, adj, pool)
    assert out.shape == (num_meshes, classes)
    assert jnp.allclose(out, ref, atol=1e-6, rtol=1e-3), (
        float(jnp.max(jnp.abs(out - ref))))

    print("KERNEL_OK")
</pallas_src>

<mosaic_0001>
module attributes {stable_mosaic.version = 11 : i64} {
  func.func @proj_kernel(%arg0: i32, %arg1: memref<128x128xf32, #tpu.memory_space<vmem>>, %arg2: memref<128x256xf32, #tpu.memory_space<vmem>>, %arg3: memref<1x256xf32, #tpu.memory_space<vmem>>, %arg4: memref<128x128xf32, #tpu.memory_space<vmem>>, %arg5: memref<128x128xbf16, #tpu.memory_space<vmem>>) attributes {dimension_semantics = [#tpu.dimension_semantics<parallel>], iteration_bounds = array<i64: 1>, scalar_prefetch = 0 : i64, scratch_operands = 0 : i64, tpu.core_type = #tpu.core_type<tc>, window_params = [{transform_indices = @transform_0, window_bounds = array<i64: 128, 128>}, {pipeline_mode = #tpu.pipeline_mode<synchronous>, transform_indices = @transform_1, window_bounds = array<i64: 128, 256>}, {pipeline_mode = #tpu.pipeline_mode<synchronous>, transform_indices = @transform_2, window_bounds = array<i64: 1, 256>}, {transform_indices = @transform_3, window_bounds = array<i64: 128, 128>}, {transform_indices = @transform_4, window_bounds = array<i64: 128, 128>}]} {
    %c0 = arith.constant 0 : index
    %c0_0 = arith.constant 0 : index
    %0 = vector.load %arg1[%c0, %c0_0] : memref<128x128xf32, #tpu.memory_space<vmem>>, vector<128x128xf32>
    %c0_1 = arith.constant 0 : index
    %c0_2 = arith.constant 0 : index
    %1 = vector.load %arg2[%c0_1, %c0_2] : memref<128x256xf32, #tpu.memory_space<vmem>>, vector<128x256xf32>
    %cst = arith.constant dense<0.000000e+00> : vector<128x256xf32>
    %2 = tpu.matmul %0, %1, %cst {dimension_numbers = #tpu.dot_dimension_numbers<[1], [0], [0], [1], [0, 0, 1, 1], [], []>} : vector<128x128xf32>, vector<128x256xf32>, vector<128x256xf32> -> vector<128x256xf32>
    %c0_3 = arith.constant 0 : index
    %c0_4 = arith.constant 0 : index
    %3 = vector.load %arg3[%c0_3, %c0_4] : memref<1x256xf32, #tpu.memory_space<vmem>>, vector<1x256xf32>
    %4 = vector.broadcast %3 : vector<1x256xf32> to vector<128x256xf32>
    %5 = arith.addf %2, %4 : vector<128x256xf32>
    %6 = vector.extract_strided_slice %5 {offsets = [0, 0], sizes = [128, 128], strides = [1, 1]} : vector<128x256xf32> to vector<128x128xf32>
    %c0_5 = arith.constant 0 : index
    %c0_6 = arith.constant 0 : index
    %7 = vector.load %arg4[%c0_5, %c0_6] : memref<128x128xf32, #tpu.memory_space<vmem>>, vector<128x128xf32>
    tpu.vector_store %arg4[%c0_5, %c0_6], %6 {strides = array<i32>} : memref<128x128xf32, #tpu.memory_space<vmem>>, vector<128x128xf32>,
    %8 = vector.extract_strided_slice %5 {offsets = [0, 128], sizes = [128, 128], strides = [1, 1]} : vector<128x256xf32> to vector<128x128xf32>
    %9 = arith.truncf %8 : vector<128x128xf32> to vector<128x128xbf16>
    %c0_7 = arith.constant 0 : index
    %c0_8 = arith.constant 0 : index
    %10 = vector.load %arg5[%c0_7, %c0_8] : memref<128x128xbf16, #tpu.memory_space<vmem>>, vector<128x128xbf16>
    tpu.vector_store %arg5[%c0_7, %c0_8], %9 {strides = array<i32>} : memref<128x128xbf16, #tpu.memory_space<vmem>>, vector<128x128xbf16>,
    return
  }
  func.func @transform_0(%arg0: i32) -> (i32, i32) {
    %c0_i32 = arith.constant 0 : i32
    %c0_i32_0 = arith.constant 0 : i32
    return %arg0, %c0_i32 : i32, i32
  }
  func.func @transform_1(%arg0: i32) -> (i32, i32) {
    %c0_i32 = arith.constant 0 : i32
    %c0_i32_0 = arith.constant 0 : i32
    %c0_i32_1 = arith.constant 0 : i32
    return %c0_i32, %c0_i32_0 : i32, i32
  }
  func.func @transform_2(%arg0: i32) -> (i32, i32) {
    %c0_i32 = arith.constant 0 : i32
    %c0_i32_0 = arith.constant 0 : i32
    %c0_i32_1 = arith.constant 0 : i32
    return %c0_i32, %c0_i32_0 : i32, i32
  }
  func.func @transform_3(%arg0: i32) -> (i32, i32) {
    %c0_i32 = arith.constant 0 : i32
    %c0_i32_0 = arith.constant 0 : i32
    return %arg0, %c0_i32 : i32, i32
  }
  func.func @transform_4(%arg0: i32) -> (i32, i32) {
    %c0_i32 = arith.constant 0 : i32
    %c0_i32_0 = arith.constant 0 : i32
    return %arg0, %c0_i32 : i32, i32
  }
}

module attributes {stable_mosaic.version = 11 : i64} {
  func.func @agg_relu_kernel(%arg0: i32, %arg1: i32, %arg2: memref<128x128xbf16, #tpu.memory_space<vmem>>, %arg3: memref<128x128xf32, #tpu.memory_space<vmem>>, %arg4: memref<128x128xbf16, #tpu.memory_space<vmem>>, %arg5: memref<128x128xf32, #tpu.memory_space<vmem>>, %arg6: memref<128x128xf32, #tpu.memory_space<vmem>>) attributes {dimension_semantics = [#tpu.dimension_semantics<parallel>, #tpu.dimension_semantics<arbitrary>], iteration_bounds = array<i64: 1, 1>, scalar_prefetch = 0 : i64, scratch_operands = 1 : i64, tpu.core_type = #tpu.core_type<tc>, window_params = [{transform_indices = @transform_0, window_bounds = array<i64: 128, 128>}, {transform_indices = @transform_1, window_bounds = array<i64: 128, 128>}, {transform_indices = @transform_2, window_bounds = array<i64: 128, 128>}, {transform_indices = @transform_3, window_bounds = array<i64: 128, 128>}]} {
    %c0_i32 = arith.constant 0 : i32
    %0 = arith.cmpi eq, %arg1, %c0_i32 : i32
    %1 = arith.extui %0 : i1 to i32
    %c0_i32_0 = arith.constant 0 : i32
    %2 = arith.cmpi ne, %1, %c0_i32_0 : i32
    scf.if %2 {
      %c0_10 = arith.constant 0 : index
      %c0_11 = arith.constant 0 : index
      %12 = vector.load %arg3[%c0_10, %c0_11] : memref<128x128xf32, #tpu.memory_space<vmem>>, vector<128x128xf32>
      %c0_12 = arith.constant 0 : index
      %c0_13 = arith.constant 0 : index
      %13 = vector.load %arg6[%c0_12, %c0_13] : memref<128x128xf32, #tpu.memory_space<vmem>>, vector<128x128xf32>
      tpu.vector_store %arg6[%c0_12, %c0_13], %12 {strides = array<i32>} : memref<128x128xf32, #tpu.memory_space<vmem>>, vector<128x128xf32>,
    } else {
    }
    %c0 = arith.constant 0 : index
    %c0_1 = arith.constant 0 : index
    %3 = vector.load %arg6[%c0, %c0_1] : memref<128x128xf32, #tpu.memory_space<vmem>>, vector<128x128xf32>
    %c0_2 = arith.constant 0 : index
    %c0_3 = arith.constant 0 : index
    %4 = vector.load %arg2[%c0_2, %c0_3] : memref<128x128xbf16, #tpu.memory_space<vmem>>, vector<128x128xbf16>
    %c0_4 = arith.constant 0 : index
    %c0_5 = arith.constant 0 : index
    %5 = vector.load %arg4[%c0_4, %c0_5] : memref<128x128xbf16, #tpu.memory_space<vmem>>, vector<128x128xbf16>
    %cst = arith.constant dense<0.000000e+00> : vector<128x128xf32>
    %6 = tpu.matmul %4, %5, %cst {dimension_numbers = #tpu.dot_dimension_numbers<[1], [0], [0], [1], [0, 0, 1, 1], [], []>} : vector<128x128xbf16>, vector<128x128xbf16>, vector<128x128xf32> -> vector<128x128xf32>
    %7 = arith.addf %3, %6 : vector<128x128xf32>
    %c0_6 = arith.constant 0 : index
    %c0_7 = arith.constant 0 : index
    %8 = vector.load %arg6[%c0_6, %c0_7] : memref<128x128xf32, #tpu.memory_space<vmem>>, vector<128x128xf32>
    tpu.vector_store %arg6[%c0_6, %c0_7], %7 {strides = array<i32>} : memref<128x128xf32, #tpu.memory_space<vmem>>, vector<128x128xf32>,
    %c0_i32_8 = arith.constant 0 : i32
    %9 = arith.cmpi eq, %arg1, %c0_i32_8 : i32
    %10 = arith.extui %9 : i1 to i32
    %c0_i32_9 = arith.constant 0 : i32
    %11 = arith.cmpi ne, %10, %c0_i32_9 : i32
    scf.if %11 {
      %c0_10 = arith.constant 0 : index
      %c0_11 = arith.constant 0 : index
      %12 = vector.load %arg6[%c0_10, %c0_11] : memref<128x128xf32, #tpu.memory_space<vmem>>, vector<128x128xf32>
      %cst_12 = arith.constant 0.000000e+00 : f32
      %13 = vector.broadcast %cst_12 : f32 to vector<128x128xf32>
      %14 = arith.maximumf %12, %13 : vector<128x128xf32>
      %c0_13 = arith.constant 0 : index
      %c0_14 = arith.constant 0 : index
      %15 = vector.load %arg5[%c0_13, %c0_14] : memref<128x128xf32, #tpu.memory_space<vmem>>, vector<128x128xf32>
      tpu.vector_store %arg5[%c0_13, %c0_14], %14 {strides = array<i32>} : memref<128x128xf32, #tpu.memory_space<vmem>>, vector<128x128xf32>,
    } else {
    }
    return
  }
  func.func @transform_0(%arg0: i32, %arg1: i32) -> (i32, i32) {
    %c0_i32 = arith.constant 0 : i32
    return %arg0, %arg1 : i32, i32
  }
  func.func @transform_1(%arg0: i32, %arg1: i32) -> (i32, i32) {
    %c0_i32 = arith.constant 0 : i32
    %c0_i32_0 = arith.constant 0 : i32
    return %arg0, %c0_i32 : i32, i32
  }
  func.func @transform_2(%arg0: i32, %arg1: i32) -> (i32, i32) {
    %c0_i32 = arith.constant 0 : i32
    %c0_i32_0 = arith.constant 0 : i32
    return %arg1, %c0_i32 : i32, i32
  }
  func.func @transform_3(%arg0: i32, %arg1: i32) -> (i32, i32) {
    %c0_i32 = arith.constant 0 : i32
    %c0_i32_0 = arith.constant 0 : i32
    return %arg0, %c0_i32 : i32, i32
  }
}

module attributes {stable_mosaic.version = 11 : i64} {
  func.func @head_kernel(%arg0: i32, %arg1: memref<8x128xf32, #tpu.memory_space<vmem>>, %arg2: memref<128x128xf32, #tpu.memory_space<vmem>>, %arg3: memref<128x1024xf32, #tpu.memory_space<vmem>>, %arg4: memref<1x1024xf32, #tpu.memory_space<vmem>>, %arg5: memref<1024x128xf32, #tpu.memory_space<vmem>>, %arg6: memref<1x128xf32, #tpu.memory_space<vmem>>, %arg7: memref<8x128xf32, #tpu.memory_space<vmem>>, %arg8: memref<8x128xf32, #tpu.memory_space<vmem>>) attributes {dimension_semantics = [#tpu.dimension_semantics<arbitrary>], iteration_bounds = array<i64: 1>, scalar_prefetch = 0 : i64, scratch_operands = 1 : i64, tpu.core_type = #tpu.core_type<tc>, window_params = [{transform_indices = @transform_0, window_bounds = array<i64: 8, 128>}, {transform_indices = @transform_1, window_bounds = array<i64: 128, 128>}, {pipeline_mode = #tpu.pipeline_mode<synchronous>, transform_indices = @transform_2, window_bounds = array<i64: 128, 1024>}, {pipeline_mode = #tpu.pipeline_mode<synchronous>, transform_indices = @transform_3, window_bounds = array<i64: 1, 1024>}, {pipeline_mode = #tpu.pipeline_mode<synchronous>, transform_indices = @transform_4, window_bounds = array<i64: 1024, 128>}, {pipeline_mode = #tpu.pipeline_mode<synchronous>, transform_indices = @transform_5, window_bounds = array<i64: 1, 128>}, {pipeline_mode = #tpu.pipeline_mode<synchronous>, transform_indices = @transform_6, window_bounds = array<i64: 8, 128>}]} {
    %c0_i32 = arith.constant 0 : i32
    %0 = arith.cmpi eq, %arg0, %c0_i32 : i32
    %1 = arith.extui %0 : i1 to i32
    %c0_i32_0 = arith.constant 0 : i32
    %2 = arith.cmpi ne, %1, %c0_i32_0 : i32
    scf.if %2 {
      %cst_10 = arith.constant 0.000000e+00 : f32
      %12 = vector.broadcast %cst_10 : f32 to vector<8x128xf32>
      %c0_11 = arith.constant 0 : index
      %c0_12 = arith.constant 0 : index
      %13 = vector.load %arg8[%c0_11, %c0_12] : memref<8x128xf32, #tpu.memory_space<vmem>>, vector<8x128xf32>
      tpu.vector_store %arg8[%c0_11, %c0_12], %12 {strides = array<i32>} : memref<8x128xf32, #tpu.memory_space<vmem>>, vector<8x128xf32>,
    } else {
    }
    %c0 = arith.constant 0 : index
    %c0_1 = arith.constant 0 : index
    %3 = vector.load %arg8[%c0, %c0_1] : memref<8x128xf32, #tpu.memory_space<vmem>>, vector<8x128xf32>
    %c0_2 = arith.constant 0 : index
    %c0_3 = arith.constant 0 : index
    %4 = vector.load %arg1[%c0_2, %c0_3] : memref<8x128xf32, #tpu.memory_space<vmem>>, vector<8x128xf32>
    %c0_4 = arith.constant 0 : index
    %c0_5 = arith.constant 0 : index
    %5 = vector.load %arg2[%c0_4, %c0_5] : memref<128x128xf32, #tpu.memory_space<vmem>>, vector<128x128xf32>
    %cst = arith.constant dense<0.000000e+00> : vector<8x128xf32>
    %6 = tpu.matmul %4, %5, %cst {dimension_numbers = #tpu.dot_dimension_numbers<[1], [0], [0], [1], [0, 0, 1, 1], [], []>} : vector<8x128xf32>, vector<128x128xf32>, vector<8x128xf32> -> vector<8x128xf32>
    %7 = arith.addf %3, %6 : vector<8x128xf32>
    %c0_6 = arith.constant 0 : index
    %c0_7 = arith.constant 0 : index
    %8 = vector.load %arg8[%c0_6, %c0_7] : memref<8x128xf32, #tpu.memory_space<vmem>>, vector<8x128xf32>
    tpu.vector_store %arg8[%c0_6, %c0_7], %7 {strides = array<i32>} : memref<8x128xf32, #tpu.memory_space<vmem>>, vector<8x128xf32>,
    %c0_i32_8 = arith.constant 0 : i32
    %9 = arith.cmpi eq, %arg0, %c0_i32_8 : i32
    %10 = arith.extui %9 : i1 to i32
    %c0_i32_9 = arith.constant 0 : i32
    %11 = arith.cmpi ne, %10, %c0_i32_9 : i32
    scf.if %11 {
      %c0_10 = arith.constant 0 : index
      %c0_11 = arith.constant 0 : index
      %12 = vector.load %arg8[%c0_10, %c0_11] : memref<8x128xf32, #tpu.memory_space<vmem>>, vector<8x128xf32>
      %c0_12 = arith.constant 0 : index
      %c0_13 = arith.constant 0 : index
      %13 = vector.load %arg3[%c0_12, %c0_13] : memref<128x1024xf32, #tpu.memory_space<vmem>>, vector<128x1024xf32>
      %cst_14 = arith.constant dense<0.000000e+00> : vector<8x1024xf32>
      %14 = tpu.matmul %12, %13, %cst_14 {dimension_numbers = #tpu.dot_dimension_numbers<[1], [0], [0], [1], [0, 0, 1, 1], [], []>} : vector<8x128xf32>, vector<128x1024xf32>, vector<8x1024xf32> -> vector<8x1024xf32>
      %c0_15 = arith.constant 0 : index
      %c0_16 = arith.constant 0 : index
      %15 = vector.load %arg4[%c0_15, %c0_16] : memref<1x1024xf32, #tpu.memory_space<vmem>>, vector<1x1024xf32>
      %16 = vector.broadcast %15 : vector<1x1024xf32> to vector<8x1024xf32>
      %17 = arith.addf %14, %16 : vector<8x1024xf32>
      %cst_17 = arith.constant 0.000000e+00 : f32
      %18 = vector.broadcast %cst_17 : f32 to vector<8x1024xf32>
      %19 = arith.maximumf %17, %18 : vector<8x1024xf32>
      %c0_18 = arith.constant 0 : index
      %c0_19 = arith.constant 0 : index
      %20 = vector.load %arg5[%c0_18, %c0_19] : memref<1024x128xf32, #tpu.memory_space<vmem>>, vector<1024x128xf32>
      %cst_20 = arith.constant dense<0.000000e+00> : vector<8x128xf32>
      %21 = tpu.matmul %19, %20, %cst_20 {dimension_numbers = #tpu.dot_dimension_numbers<[1], [0], [0], [1], [0, 0, 1, 1], [], []>} : vector<8x1024xf32>, vector<1024x128xf32>, vector<8x128xf32> -> vector<8x128xf32>
      %c0_21 = arith.constant 0 : index
      %c0_22 = arith.constant 0 : index
      %22 = vector.load %arg6[%c0_21, %c0_22] : memref<1x128xf32, #tpu.memory_space<vmem>>, vector<1x128xf32>
      %23 = vector.broadcast %22 : vector<1x128xf32> to vector<8x128xf32>
      %24 = arith.addf %21, %23 : vector<8x128xf32>
      %c0_23 = arith.constant 0 : index
      %c0_24 = arith.constant 0 : index
      %25 = vector.load %arg7[%c0_23, %c0_24] : memref<8x128xf32, #tpu.memory_space<vmem>>, vector<8x128xf32>
      tpu.vector_store %arg7[%c0_23, %c0_24], %24 {strides = array<i32>} : memref<8x128xf32, #tpu.memory_space<vmem>>, vector<8x128xf32>,
    } else {
    }
    return
  }
  func.func @transform_0(%arg0: i32) -> (i32, i32) {
    %c0_i32 = arith.constant 0 : i32
    %c0_i32_0 = arith.constant 0 : i32
    return %c0_i32, %arg0 : i32, i32
  }
  func.func @transform_1(%arg0: i32) -> (i32, i32) {
    %c0_i32 = arith.constant 0 : i32
    %c0_i32_0 = arith.constant 0 : i32
    return %arg0, %c0_i32 : i32, i32
  }
  func.func @transform_2(%arg0: i32) -> (i32, i32) {
    %c0_i32 = arith.constant 0 : i32
    %c0_i32_0 = arith.constant 0 : i32
    %c0_i32_1 = arith.constant 0 : i32
    return %c0_i32, %c0_i32_0 : i32, i32
  }
  func.func @transform_3(%arg0: i32) -> (i32, i32) {
    %c0_i32 = arith.constant 0 : i32
    %c0_i32_0 = arith.constant 0 : i32
    %c0_i32_1 = arith.constant 0 : i32
    return %c0_i32, %c0_i32_0 : i32, i32
  }
  func.func @transform_4(%arg0: i32) -> (i32, i32) {
    %c0_i32 = arith.constant 0 : i32
    %c0_i32_0 = arith.constant 0 : i32
    %c0_i32_1 = arith.constant 0 : i32
    return %c0_i32, %c0_i32_0 : i32, i32
  }
  func.func @transform_5(%arg0: i32) -> (i32, i32) {
    %c0_i32 = arith.constant 0 : i32
    %c0_i32_0 = arith.constant 0 : i32
    %c0_i32_1 = arith.constant 0 : i32
    return %c0_i32, %c0_i32_0 : i32, i32
  }
  func.func @transform_6(%arg0: i32) -> (i32, i32) {
    %c0_i32 = arith.constant 0 : i32
    %c0_i32_0 = arith.constant 0 : i32
    %c0_i32_1 = arith.constant 0 : i32
    return %c0_i32, %c0_i32_0 : i32, i32
  }
}

module attributes {stable_mosaic.version = 11 : i64} {
  func.func @proj_kernel(%arg0: i32, %arg1: memref<128x128xf32, #tpu.memory_space<vmem>>, %arg2: memref<128x256xf32, #tpu.memory_space<vmem>>, %arg3: memref<1x256xf32, #tpu.memory_space<vmem>>, %arg4: memref<128x128xf32, #tpu.memory_space<vmem>>, %arg5: memref<128x128xbf16, #tpu.memory_space<vmem>>) attributes {dimension_semantics = [#tpu.dimension_semantics<parallel>], iteration_bounds = array<i64: 1>, scalar_prefetch = 0 : i64, scratch_operands = 0 : i64, tpu.core_type = #tpu.core_type<tc>, window_params = [{transform_indices = @transform_0, window_bounds = array<i64: 128, 128>}, {pipeline_mode = #tpu.pipeline_mode<synchronous>, transform_indices = @transform_1, window_bounds = array<i64: 128, 256>}, {pipeline_mode = #tpu.pipeline_mode<synchronous>, transform_indices = @transform_2, window_bounds = array<i64: 1, 256>}, {transform_indices = @transform_3, window_bounds = array<i64: 128, 128>}, {transform_indices = @transform_4, window_bounds = array<i64: 128, 128>}]} {
    %c0 = arith.constant 0 : index
    %c0_0 = arith.constant 0 : index
    %0 = vector.load %arg1[%c0, %c0_0] : memref<128x128xf32, #tpu.memory_space<vmem>>, vector<128x128xf32>
    %c0_1 = arith.constant 0 : index
    %c0_2 = arith.constant 0 : index
    %1 = vector.load %arg2[%c0_1, %c0_2] : memref<128x256xf32, #tpu.memory_space<vmem>>, vector<128x256xf32>
    %cst = arith.constant dense<0.000000e+00> : vector<128x256xf32>
    %2 = tpu.matmul %0, %1, %cst {dimension_numbers = #tpu.dot_dimension_numbers<[1], [0], [0], [1], [0, 0, 1, 1], [], []>} : vector<128x128xf32>, vector<128x256xf32>, vector<128x256xf32> -> vector<128x256xf32>
    %c0_3 = arith.constant 0 : index
    %c0_4 = arith.constant 0 : index
    %3 = vector.load %arg3[%c0_3, %c0_4] : memref<1x256xf32, #tpu.memory_space<vmem>>, vector<1x256xf32>
    %4 = vector.broadcast %3 : vector<1x256xf32> to vector<128x256xf32>
    %5 = arith.addf %2, %4 : vector<128x256xf32>
    %6 = vector.extract_strided_slice %5 {offsets = [0, 0], sizes = [128, 128], strides = [1, 1]} : vector<128x256xf32> to vector<128x128xf32>
    %c0_5 = arith.constant 0 : index
    %c0_6 = arith.constant 0 : index
    %7 = vector.load %arg4[%c0_5, %c0_6] : memref<128x128xf32, #tpu.memory_space<vmem>>, vector<128x128xf32>
    tpu.vector_store %arg4[%c0_5, %c0_6], %6 {strides = array<i32>} : memref<128x128xf32, #tpu.memory_space<vmem>>, vector<128x128xf32>,
    %8 = vector.extract_strided_slice %5 {offsets = [0, 128], sizes = [128, 128], strides = [1, 1]} : vector<128x256xf32> to vector<128x128xf32>
    %9 = arith.truncf %8 : vector<128x128xf32> to vector<128x128xbf16>
    %c0_7 = arith.constant 0 : index
    %c0_8 = arith.constant 0 : index
    %10 = vector.load %arg5[%c0_7, %c0_8] : memref<128x128xbf16, #tpu.memory_space<vmem>>, vector<128x128xbf16>
    tpu.vector_store %arg5[%c0_7, %c0_8], %9 {strides = array<i32>} : memref<128x128xbf16, #tpu.memory_space<vmem>>, vector<128x128xbf16>,
    return
  }
  func.func @transform_0(%arg0: i32) -> (i32, i32) {
    %c0_i32 = arith.constant 0 : i32
    %c0_i32_0 = arith.constant 0 : i32
    return %arg0, %c0_i32 : i32, i32
  }
  func.func @transform_1(%arg0: i32) -> (i32, i32) {
    %c0_i32 = arith.constant 0 : i32
    %c0_i32_0 = arith.constant 0 : i32
    %c0_i32_1 = arith.constant 0 : i32
    return %c0_i32, %c0_i32_0 : i32, i32
  }
  func.func @transform_2(%arg0: i32) -> (i32, i32) {
    %c0_i32 = arith.constant 0 : i32
    %c0_i32_0 = arith.constant 0 : i32
    %c0_i32_1 = arith.constant 0 : i32
    return %c0_i32, %c0_i32_0 : i32, i32
  }
  func.func @transform_3(%arg0: i32) -> (i32, i32) {
    %c0_i32 = arith.constant 0 : i32
    %c0_i32_0 = arith.constant 0 : i32
    return %arg0, %c0_i32 : i32, i32
  }
  func.func @transform_4(%arg0: i32) -> (i32, i32) {
    %c0_i32 = arith.constant 0 : i32
    %c0_i32_0 = arith.constant 0 : i32
    return %arg0, %c0_i32 : i32, i32
  }
}

</mosaic_0001>

<bundles_post_ra>
// kernel: graph_conv_clf_forward.5
= control target key start
LH: loop header
LB: loop body
LE: loop exit
PB: predicated region body
PF: predicated region fallthrough
CT: control target
= control target key end

     0   :  { %10 = vsyncpa [#allocation3], 0  ;;  %s511_s15 = smov [#allocation2]   ;;  %s727_s0 = inlined_call_operand.vmem [shape: f32[128,128], index: 0, kind: input, shape index: {}]   ;;  %s728_s1 = inlined_call_operand.hbm [shape: f32[128,256], index: 1, kind: input, shape index: {}]   ;;  %s729_s2 = inlined_call_operand.vmem [shape: f32[1,256], index: 2, kind: input, shape index: {}]   ;;  %s730_s3 = inlined_call_operand.vmem [shape: f32[128,128], index: 3, kind: output, shape index: {0}]   ;;  %s731_s4 = inlined_call_operand.vmem [shape: bf16[128,128], index: 4, kind: output, shape index: {1}]  }
   0x1   :  { %s18_s16 = sshll.u32 %s511_s15, 4  ;;  %s487_s19 = scalar_lea.hbm %s728_s1, 4096  ;;  %s19_s16 = int_to_ptr.vmem [resolvable:$true] %s18_s16 }
   0x2   :  { %p488_p0 = scmp.ne.s32.totalorder %s728_s1, %s487_s19  ;;  %p491_p1 = scmp.lt.u32.totalorder %s487_s19, %s728_s1 }
   0x4   :  { %p493_p2 = pnand %p491_p1, %p488_p0 }
   0x6   :  { %496 = shalt.err (!%p493_p2)
}
   0x7   :  { %s497_s24 = scalar_lea.vmem %s19_s16, 4096  ;;  %p502_p4 = scmp.lt.s32.totalorder %s19_s16, %s19_s16 }
   0x8   :  { %p498_p3 = scmp.ne.s32.totalorder %s19_s16, %s497_s24  ;;  %p503_p5 = scmp.lt.s32.totalorder %s497_s24, %s497_s24 }
   0xa   :  { %p504_p6 = por %p503_p5, %p502_p4 }
   0xc   :  { %p505_p7 = pnand %p504_p6, %p498_p3 }
   0xe   :  { %508 = shalt.err (!%p505_p7)
}
   0xf   :  { %s512_s25 = smov 256   ;;  %s513_s26 = smov 16  }
  0x10   :  { %24 = dma.hbm_to_vmem [thread:$0]  %s728_s1, 4096, %s19_s16, [#allocation3], %s512_s25, %s512_s25, %s513_s26  }
  0x11   :  { %509 = dma.done.wait [#allocation3], 4096  }
  0x12   :  { %510 = vsyncadd [#allocation3], 4294963200  ;;  %v514_v0 = vmov 0.0   ;;  %v47_v1 = vld [vmem:[#allocation2 + $0x8] sm:$0xff]  ;;  %v49_v2 = vld [vmem:[#allocation2 + $0x18] sm:$0xff] }
  0x13   :  { %154 = vmatprep.mubr.f32.mxu0 %v514_v0  ;;  %202 = vmatprep.mubr.f32.mxu1 %v514_v0  ;;  %v46_v3 = vld [vmem:[#allocation2] sm:$0xff]  ;;  %v435_v4 = vpack.c.bf16 %v49_v2, %v47_v1  ;;  %v48_v5 = vld [vmem:[#allocation2 + $0x10] sm:$0xff]  ;;  %v51_v6 = vld [vmem:[#allocation2 + $0x28] sm:$0xff]  ;;  %v80_v2 = vlaneseq }
  0x14   :  { %v53_v7 = vld [vmem:[#allocation2 + $0x38] sm:$0xff]  ;;  %v437_v8 = vpack.c.bf16 %v48_v5, %v46_v3  ;;  %v50_v10 = vld [vmem:[#allocation2 + $0x20] sm:$0xff]  ;;  %v52_v11 = vld [vmem:[#allocation2 + $0x30] sm:$0xff] }
  0x15   :  { %v439_v9 = vpack.c.bf16 %v53_v7, %v51_v6  ;;  %v55_v12 = vld [vmem:[#allocation2 + $0x48] sm:$0xff]  ;;  %436 = vmatprep.subr.bf16.mxu0 %v435_v4  ;;  %467 = vmatprep.subr.bf16.mxu1 %v435_v4  ;;  %v57_v13 = vld [vmem:[#allocation2 + $0x58] sm:$0xff]  ;;  %v441_v14 = vpack.c.bf16 %v52_v11, %v50_v10  ;;  %v54_v16 = vld [vmem:[#allocation2 + $0x40] sm:$0xff]  ;;  %v81_v3 = vshrl.u32 %v80_v2, 7 }
  0x16   :  { %438 = vmatpush1.bf16.msra.mxu0 %v437_v8  ;;  %475 = vmatpush1.bf16.msra.mxu1 %v437_v8  ;;  %v443_v15 = vpack.c.bf16 %v57_v13, %v55_v12  ;;  %v56_v17 = vld [vmem:[#allocation2 + $0x50] sm:$0xff]  ;;  %v59_v18 = vld [vmem:[#allocation2 + $0x68] sm:$0xff]  ;;  %v61_v19 = vld [vmem:[#allocation2 + $0x78] sm:$0xff] }
  0x17   :  { %440 = vmatprep.subr.bf16.mxu0 %v439_v9  ;;  %468 = vmatprep.subr.bf16.mxu1 %v439_v9  ;;  %v445_v20 = vpack.c.bf16 %v56_v17, %v54_v16  ;;  %v447_v21 = vpack.c.bf16 %v61_v19, %v59_v18  ;;  %v58_v22 = vld [vmem:[#allocation2 + $0x60] sm:$0xff]  ;;  %v60_v23 = vld [vmem:[#allocation2 + $0x70] sm:$0xff]  ;;  %v63_v24 = vld [vmem:[#allocation2 + $0x88] sm:$0xff]  ;;  %v82_v4 = vsub.s32 0, %v81_v3 }
  0x18   :  { %v65_v25 = vld [vmem:[#allocation2 + $0x98] sm:$0xff]  ;;  %v449_v26 = vpack.c.bf16 %v60_v23, %v58_v22  ;;  %v62_v28 = vld [vmem:[#allocation2 + $0x80] sm:$0xff]  ;;  %v64_v29 = vld [vmem:[#allocation2 + $0x90] sm:$0xff] }
  0x19   :  { %v451_v27 = vpack.c.bf16 %v65_v25, %v63_v24  ;;  %v67_v30 = vld [vmem:[#allocation2 + $0xa8] sm:$0xff]  ;;  %v69_v31 = vld [vmem:[#allocation2 + $0xb8] sm:$0xff]  ;;  %v453_v32 = vpack.c.bf16 %v64_v29, %v62_v28  ;;  %v66_v34 = vld [vmem:[#allocation2 + $0xa0] sm:$0xff] }
  0x1a   :  { %442 = vmatpush1.bf16.msra.mxu0 %v441_v14  ;;  %476 = vmatpush1.bf16.msra.mxu1 %v441_v14  ;;  %v455_v33 = vpack.c.bf16 %v69_v31, %v67_v30  ;;  %v68_v35 = vld [vmem:[#allocation2 + $0xb0] sm:$0xff]  ;;  %v71_v36 = vld [vmem:[#allocation2 + $0xc8] sm:$0xff]  ;;  %v73_v37 = vld [vmem:[#allocation2 + $0xd8] sm:$0xff] }
  0x1b   :  { %444 = vmatprep.subr.bf16.mxu0 %v443_v15  ;;  %469 = vmatprep.subr.bf16.mxu1 %v443_v15  ;;  %v457_v38 = vpack.c.bf16 %v68_v35, %v66_v34  ;;  %v459_v39 = vpack.c.bf16 %v73_v37, %v71_v36  ;;  %v70_v40 = vld [vmem:[#allocation2 + $0xc0] sm:$0xff]  ;;  %v72_v41 = vld [vmem:[#allocation2 + $0xd0] sm:$0xff]  ;;  %v75_v42 = vld [vmem:[#allocation2 + $0xe8] sm:$0xff] }
  0x1c   :  { %v77_v43 = vld [vmem:[#allocation2 + $0xf8] sm:$0xff]  ;;  %v461_v44 = vpack.c.bf16 %v72_v41, %v70_v40  ;;  %v74_v46 = vld [vmem:[#allocation2 + $0xe0] sm:$0xff]  ;;  %v76_v47 = vld [vmem:[#allocation2 + $0xf0] sm:$0xff] }
  0x1d   :  { %v463_v45 = vpack.c.bf16 %v77_v43, %v75_v42  ;;  %v465_v48 = vpack.c.bf16 %v76_v47, %v74_v46  ;;  %v30_v49 = vld [vmem:[%s727_s0] sm:$0xff]  ;;  %v31_v51 = vld [vmem:[%s727_s0 + $0x8] sm:$0xff]  ;;  %v32_v53 = vld [vmem:[%s727_s0 + $0x10] sm:$0xff] }
  0x1e   :  { %446 = vmatpush1.bf16.msra.mxu0 %v445_v20  ;;  %477 = vmatpush1.bf16.msra.mxu1 %v445_v20  ;;  %v38_v50 = vld [vmem:[%s727_s0 + $0x40] sm:$0xff]  ;;  %v39_v52 = vld [vmem:[%s727_s0 + $0x48] sm:$0xff]  ;;  %v40_v54 = vld [vmem:[%s727_s0 + $0x50] sm:$0xff] }
  0x1f   :  { %448 = vmatprep.subr.bf16.mxu0 %v447_v21  ;;  %470 = vmatprep.subr.bf16.mxu1 %v447_v21  ;;  %v33_v55 = vld [vmem:[%s727_s0 + $0x18] sm:$0xff]  ;;  %v34_v57 = vld [vmem:[%s727_s0 + $0x20] sm:$0xff]  ;;  %v35_v59 = vld [vmem:[%s727_s0 + $0x28] sm:$0xff] }
  0x20   :  { %v41_v56 = vld [vmem:[%s727_s0 + $0x58] sm:$0xff]  ;;  %v42_v58 = vld [vmem:[%s727_s0 + $0x60] sm:$0xff]  ;;  %v43_v60 = vld [vmem:[%s727_s0 + $0x68] sm:$0xff] }
  0x21   :  { %v36_v61 = vld [vmem:[%s727_s0 + $0x30] sm:$0xff]  ;;  %v37_v63 = vld [vmem:[%s727_s0 + $0x38] sm:$0xff]  ;;  %v78_v5 = vld [vmem:[%s729_s2] sm:$0x3] }
  0x22   :  { %450 = vmatpush1.bf16.msra.mxu0 %v449_v26  ;;  %478 = vmatpush1.bf16.msra.mxu1 %v449_v26  ;;  %v44_v62 = vld [vmem:[%s727_s0 + $0x70] sm:$0xff]  ;;  %v45_v1 = vld [vmem:[%s727_s0 + $0x78] sm:$0xff]  ;;  %v619_v6 = vrot.slane %v78_v5, %v82_v4 }
  0x23   :  { %452 = vmatprep.subr.bf16.mxu0 %v451_v27  ;;  %471 = vmatprep.subr.bf16.mxu1 %v451_v27 }
  0x26   :  { %454 = vmatpush1.bf16.msra.mxu0 %v453_v32  ;;  %479 = vmatpush1.bf16.msra.mxu1 %v453_v32 }
  0x27   :  { %456 = vmatprep.subr.bf16.mxu0 %v455_v33  ;;  %472 = vmatprep.subr.bf16.mxu1 %v455_v33 }
  0x2a   :  { %458 = vmatpush1.bf16.msra.mxu0 %v457_v38  ;;  %480 = vmatpush1.bf16.msra.mxu1 %v457_v38 }
  0x2b   :  { %460 = vmatprep.subr.bf16.mxu0 %v459_v39  ;;  %473 = vmatprep.subr.bf16.mxu1 %v459_v39 }
  0x2e   :  { %462 = vmatpush1.bf16.msra.mxu0 %v461_v44  ;;  %481 = vmatpush1.bf16.msra.mxu1 %v461_v44 }
  0x2f   :  { %464 = vmatprep.subr.bf16.mxu0 %v463_v45  ;;  %474 = vmatprep.subr.bf16.mxu1 %v463_v45 }
  0x32   :  { %466 = vmatpush1.bf16.msra.mxu0 %v465_v48  ;;  %482 = vmatpush1.bf16.msra.mxu1 %v465_v48 }
  0x35   :  { %155 = vmatmul.mubr.f32.vlgmr.msra.gmra.mrb[0].mxu0 %v30_v49  ;;  %203 = vmatmul.mubr.f32.vlgmr.msra.gmra.mrb[0].mxu1 %v38_v50 }
  0x36   :  { %160 = vmatprep.mubr.f32.mxu0 %v514_v0  ;;  %208 = vmatprep.mubr.f32.mxu1 %v514_v0 }
  0x39   :  { %161 = vmatmul.mubr.f32.gmra.mrb[2].mxu0 %v31_v51  ;;  %209 = vmatmul.mubr.f32.gmra.mrb[2].mxu1 %v39_v52 }
  0x3a   :  { %166 = vmatprep.mubr.f32.mxu0 %v514_v0  ;;  %214 = vmatprep.mubr.f32.mxu1 %v514_v0 }
  0x3d   :  { %167 = vmatmul.mubr.f32.gmra.mrb[4].mxu0 %v32_v53  ;;  %215 = vmatmul.mubr.f32.gmra.mrb[4].mxu1 %v40_v54 }
  0x3e   :  { %172 = vmatprep.mubr.f32.mxu0 %v514_v0  ;;  %220 = vmatprep.mubr.f32.mxu1 %v514_v0 }
  0x41   :  { %173 = vmatmul.mubr.f32.gmra.mrb[6].mxu0 %v33_v55  ;;  %221 = vmatmul.mubr.f32.gmra.mrb[6].mxu1 %v41_v56 }
  0x42   :  { %178 = vmatprep.mubr.f32.mxu0 %v514_v0  ;;  %226 = vmatprep.mubr.f32.mxu1 %v514_v0 }
  0x45   :  { %179 = vmatmul.mubr.f32.gmra.mrb[8].mxu0 %v34_v57  ;;  %227 = vmatmul.mubr.f32.gmra.mrb[8].mxu1 %v42_v58 }
  0x46   :  { %184 = vmatprep.mubr.f32.mxu0 %v514_v0  ;;  %232 = vmatprep.mubr.f32.mxu1 %v514_v0 }
  0x49   :  { %185 = vmatmul.mubr.f32.gmra.mrb[10].mxu0 %v35_v59  ;;  %233 = vmatmul.mubr.f32.gmra.mrb[10].mxu1 %v43_v60 }
  0x4a   :  { %190 = vmatprep.mubr.f32.mxu0 %v514_v0  ;;  %238 = vmatprep.mubr.f32.mxu1 %v514_v0 }
  0x4d   :  { %191 = vmatmul.mubr.f32.gmra.mrb[12].mxu0 %v36_v61  ;;  %239 = vmatmul.mubr.f32.gmra.mrb[12].mxu1 %v44_v62 }
  0x4e   :  { %196 = vmatprep.mubr.f32.mxu0 %v514_v0  ;;  %244 = vmatprep.mubr.f32.mxu1 %v514_v0  ;;  %v86_v0 = vsub.s32 1, %v81_v3 }
  0x50   :  { %v623_v13 = vrot.slane %v78_v5, %v86_v0 }
  0x51   :  { %197 = vmatmul.mubr.f32.gmra.mrb[14].mxu0 %v37_v63  ;;  %245 = vmatmul.mubr.f32.gmra.mrb[14].mxu1 %v45_v1 }
 0x108   :  { %v156_v7 = vpop.f32.mrb[0].mxu0  ;;  %v204_v8 = vpop.f32.mrb[0].mxu1 }
 0x109   :  { %v157_v9 = vadd.f32 %v156_v7, %v619_v6  ;;  %v205_v10 = vadd.f32 %v204_v8, %v619_v6  ;;  %v158_v11 = vpop.f32.mrb[1].mxu0  ;;  %v206_v12 = vpop.f32.mrb[1].mxu1 }
 0x10a   :  { %v159_v20 = vadd.f32 %v158_v11, %v623_v13  ;;  %v207_v21 = vadd.f32 %v206_v12, %v623_v13 }
 0x10b   :  { %251 = vst [vmem:[%s730_s3] sm:$0xff] %v157_v9  ;;  %259 = vst [vmem:[%s730_s3 + $0x40] sm:$0xff] %v205_v10 }
 0x10c   :  { %v162_v14 = vpop.f32.mrb[2].mxu0  ;;  %v210_v15 = vpop.f32.mrb[2].mxu1 }
 0x10d   :  { %v163_v16 = vadd.f32 %v162_v14, %v619_v6  ;;  %v211_v17 = vadd.f32 %v210_v15, %v619_v6  ;;  %v164_v18 = vpop.f32.mrb[3].mxu0  ;;  %v212_v19 = vpop.f32.mrb[3].mxu1 }
 0x10e   :  { %v165_v22 = vadd.f32 %v164_v18, %v623_v13  ;;  %v213_v23 = vadd.f32 %v212_v19, %v623_v13 }
 0x10f   :  { %252 = vst [vmem:[%s730_s3 + $0x8] sm:$0xff] %v163_v16  ;;  %260 = vst [vmem:[%s730_s3 + $0x48] sm:$0xff] %v211_v17 }
 0x110   :  { %v391_v24 = vpack.c.bf16 %v165_v22, %v159_v20  ;;  %v411_v25 = vpack.c.bf16 %v213_v23, %v207_v21  ;;  %v168_v26 = vpop.f32.mrb[4].mxu0  ;;  %v216_v27 = vpop.f32.mrb[4].mxu1 }
 0x111   :  { %v169_v28 = vadd.f32 %v168_v26, %v619_v6  ;;  %v217_v29 = vadd.f32 %v216_v27, %v619_v6  ;;  %v170_v30 = vpop.f32.mrb[5].mxu0  ;;  %v218_v31 = vpop.f32.mrb[5].mxu1 }
 0x112   :  { %392 = vst [vmem:[%s731_s4] sm:$0xff] %v391_v24   ;;  %431 = vst [vmem:[%s731_s4 + $0x20] sm:$0xff] %v411_v25   ;;  %v171_v38 = vadd.f32 %v170_v30, %v623_v13  ;;  %v219_v39 = vadd.f32 %v218_v31, %v623_v13 }
 0x113   :  { %253 = vst [vmem:[%s730_s3 + $0x10] sm:$0xff] %v169_v28  ;;  %261 = vst [vmem:[%s730_s3 + $0x50] sm:$0xff] %v217_v29 }
 0x114   :  { %v174_v32 = vpop.f32.mrb[6].mxu0  ;;  %v222_v33 = vpop.f32.mrb[6].mxu1 }
 0x115   :  { %v175_v34 = vadd.f32 %v174_v32, %v619_v6  ;;  %v223_v35 = vadd.f32 %v222_v33, %v619_v6  ;;  %v176_v36 = vpop.f32.mrb[7].mxu0  ;;  %v224_v37 = vpop.f32.mrb[7].mxu1 }
 0x116   :  { %v177_v40 = vadd.f32 %v176_v36, %v623_v13  ;;  %v225_v41 = vadd.f32 %v224_v37, %v623_v13 }
 0x117   :  { %254 = vst [vmem:[%s730_s3 + $0x18] sm:$0xff] %v175_v34  ;;  %262 = vst [vmem:[%s730_s3 + $0x58] sm:$0xff] %v223_v35 }
 0x118   :  { %v396_v42 = vpack.c.bf16 %v177_v40, %v171_v38  ;;  %v416_v43 = vpack.c.bf16 %v225_v41, %v219_v39  ;;  %v180_v44 = vpop.f32.mrb[8].mxu0  ;;  %v228_v45 = vpop.f32.mrb[8].mxu1 }
 0x119   :  { %v181_v46 = vadd.f32 %v180_v44, %v619_v6  ;;  %v229_v47 = vadd.f32 %v228_v45, %v619_v6  ;;  %v182_v48 = vpop.f32.mrb[9].mxu0  ;;  %v230_v49 = vpop.f32.mrb[9].mxu1 }
 0x11a   :  { %428 = vst [vmem:[%s731_s4 + $0x8] sm:$0xff] %v396_v42   ;;  %432 = vst [vmem:[%s731_s4 + $0x28] sm:$0xff] %v416_v43   ;;  %v183_v56 = vadd.f32 %v182_v48, %v623_v13  ;;  %v231_v57 = vadd.f32 %v230_v49, %v623_v13 }
 0x11b   :  { %255 = vst [vmem:[%s730_s3 + $0x20] sm:$0xff] %v181_v46  ;;  %263 = vst [vmem:[%s730_s3 + $0x60] sm:$0xff] %v229_v47 }
 0x11c   :  { %v186_v50 = vpop.f32.mrb[10].mxu0  ;;  %v234_v51 = vpop.f32.mrb[10].mxu1 }
 0x11d   :  { %v187_v52 = vadd.f32 %v186_v50, %v619_v6  ;;  %v235_v53 = vadd.f32 %v234_v51, %v619_v6  ;;  %v188_v54 = vpop.f32.mrb[11].mxu0  ;;  %v236_v55 = vpop.f32.mrb[11].mxu1 }
 0x11e   :  { %v189_v58 = vadd.f32 %v188_v54, %v623_v13  ;;  %v237_v59 = vadd.f32 %v236_v55, %v623_v13 }
 0x11f   :  { %256 = vst [vmem:[%s730_s3 + $0x28] sm:$0xff] %v187_v52  ;;  %264 = vst [vmem:[%s730_s3 + $0x68] sm:$0xff] %v235_v53 }
 0x120   :  { %v401_v60 = vpack.c.bf16 %v189_v58, %v183_v56  ;;  %v421_v61 = vpack.c.bf16 %v237_v59, %v231_v57  ;;  %v192_v62 = vpop.f32.mrb[12].mxu0  ;;  %v240_v63 = vpop.f32.mrb[12].mxu1 }
 0x121   :  { %v193_v1 = vadd.f32 %v192_v62, %v619_v6  ;;  %v241_v2 = vadd.f32 %v240_v63, %v619_v6  ;;  %v194_v3 = vpop.f32.mrb[13].mxu0  ;;  %v242_v4 = vpop.f32.mrb[13].mxu1 }
 0x122   :  { %429 = vst [vmem:[%s731_s4 + $0x10] sm:$0xff] %v401_v60   ;;  %433 = vst [vmem:[%s731_s4 + $0x30] sm:$0xff] %v421_v61   ;;  %v195_v11 = vadd.f32 %v194_v3, %v623_v13  ;;  %v243_v12 = vadd.f32 %v242_v4, %v623_v13 }
 0x123   :  { %257 = vst [vmem:[%s730_s3 + $0x30] sm:$0xff] %v193_v1  ;;  %265 = vst [vmem:[%s730_s3 + $0x70] sm:$0xff] %v241_v2 }
 0x124   :  { %v198_v5 = vpop.f32.mrb[14].mxu0  ;;  %v246_v0 = vpop.f32.mrb[14].mxu1 }
 0x125   :  { %v199_v7 = vadd.f32 %v198_v5, %v619_v6  ;;  %v247_v8 = vadd.f32 %v246_v0, %v619_v6  ;;  %v200_v9 = vpop.f32.mrb[15].mxu0  ;;  %v248_v10 = vpop.f32.mrb[15].mxu1 }
 0x126   :  { %v201_v14 = vadd.f32 %v200_v9, %v623_v13  ;;  %v249_v15 = vadd.f32 %v248_v10, %v623_v13 }
 0x127   :  { %258 = vst [vmem:[%s730_s3 + $0x38] sm:$0xff] %v199_v7  ;;  %266 = vst [vmem:[%s730_s3 + $0x78] sm:$0xff] %v247_v8 }
 0x128   :  { %v406_v16 = vpack.c.bf16 %v201_v14, %v195_v11  ;;  %v426_v6 = vpack.c.bf16 %v249_v15, %v243_v12 }
 0x12a   :  { %430 = vst [vmem:[%s731_s4 + $0x18] sm:$0xff] %v406_v16   ;;  %434 = vst [vmem:[%s731_s4 + $0x38] sm:$0xff] %v426_v6  }
 0x12b   :  { %355 = vsyncpa [#allocation3], 1 }

// kernel: graph_conv_clf_forward.6
= control target key start
LH: loop header
LB: loop body
LE: loop exit
PB: predicated region body
PF: predicated region fallthrough
CT: control target
= control target key end

     0   :  { %s639_s2 = inlined_call_operand.vmem [shape: bf16[128,128], index: 2, kind: input, shape index: {}]   ;;  %s640_s0 = inlined_call_operand.vmem [shape: bf16[128,128], index: 0, kind: input, shape index: {}]   ;;  %s641_s1 = inlined_call_operand.vmem [shape: f32[128,128], index: 1, kind: input, shape index: {}]   ;;  %s642_s3 = inlined_call_operand.vmem [shape: f32[128,128], index: 3, kind: output, shape index: {}]  }
   0x1   :  { %v459_v0 = vld [vmem:[%s639_s2] sm:$0xff]   ;;  %v460_v1 = vld [vmem:[%s639_s2 + $0x8] sm:$0xff]   ;;  %v461_v2 = vld [vmem:[%s639_s2 + $0x10] sm:$0xff]  }
   0x2   :  { %411 = vmatprep.subr.bf16.mxu0 %v459_v0  ;;  %443 = vmatprep.subr.bf16.mxu1 %v459_v0  ;;  %v462_v3 = vld [vmem:[%s639_s2 + $0x18] sm:$0xff]   ;;  %v467_v4 = vld [vmem:[%s640_s0] sm:$0xff]   ;;  %v464_v7 = vld [vmem:[%s639_s2 + $0x28] sm:$0xff]  }
   0x3   :  { %412 = vmatpush3.bf16.msra.mxu0 %v459_v0  ;;  %451 = vmatpush3.bf16.msra.mxu1 %v459_v0  ;;  %v468_v5 = vld [vmem:[%s640_s0 + $0x20] sm:$0xff]   ;;  %v465_v8 = vld [vmem:[%s639_s2 + $0x30] sm:$0xff]   ;;  %v466_v9 = vld [vmem:[%s639_s2 + $0x38] sm:$0xff]  }
   0x4   :  { %413 = vmatprep.subr.bf16.mxu0 %v460_v1  ;;  %444 = vmatprep.subr.bf16.mxu1 %v460_v1  ;;  %v463_v6 = vld [vmem:[%s639_s2 + $0x20] sm:$0xff]   ;;  %v469_v10 = vld [vmem:[%s640_s0 + $0x8] sm:$0xff]   ;;  %v471_v12 = vld [vmem:[%s640_s0 + $0x10] sm:$0xff]  }
   0x5   :  { %427 = vmatprep.mubr.bf16.mxu0 %v467_v4  ;;  %435 = vmatprep.mubr.bf16.mxu1 %v468_v5  ;;  %v470_v11 = vld [vmem:[%s640_s0 + $0x28] sm:$0xff]   ;;  %v472_v13 = vld [vmem:[%s640_s0 + $0x30] sm:$0xff]   ;;  %v473_v14 = vld [vmem:[%s640_s0 + $0x18] sm:$0xff]  }
   0x6   :  { %v474_v15 = vld [vmem:[%s640_s0 + $0x38] sm:$0xff]   ;;  %v21_v16 = vld [vmem:[%s641_s1 + $0x10] sm:$0xff]  ;;  %v19_v18 = vld [vmem:[%s641_s1] sm:$0xff] }
   0x7   :  { %414 = vmatpush3.bf16.msra.mxu0 %v460_v1  ;;  %452 = vmatpush3.bf16.msra.mxu1 %v460_v1  ;;  %v29_v17 = vld [vmem:[%s641_s1 + $0x50] sm:$0xff]  ;;  %v27_v19 = vld [vmem:[%s641_s1 + $0x40] sm:$0xff]  ;;  %v22_v22 = vld [vmem:[%s641_s1 + $0x18] sm:$0xff] }
   0x8   :  { %415 = vmatprep.subr.bf16.mxu0 %v461_v2  ;;  %445 = vmatprep.subr.bf16.mxu1 %v461_v2  ;;  %v30_v23 = vld [vmem:[%s641_s1 + $0x58] sm:$0xff]  ;;  %v20_v28 = vld [vmem:[%s641_s1 + $0x8] sm:$0xff]  ;;  %v25_v48 = vld [vmem:[%s641_s1 + $0x30] sm:$0xff] }
   0x9   :  { %v28_v29 = vld [vmem:[%s641_s1 + $0x48] sm:$0xff]  ;;  %v33_v49 = vld [vmem:[%s641_s1 + $0x70] sm:$0xff]  ;;  %v23_v50 = vld [vmem:[%s641_s1 + $0x20] sm:$0xff] }
   0xa   :  { %v31_v51 = vld [vmem:[%s641_s1 + $0x60] sm:$0xff]  ;;  %v26_v54 = vld [vmem:[%s641_s1 + $0x38] sm:$0xff]  ;;  %v24_v60 = vld [vmem:[%s641_s1 + $0x28] sm:$0xff] }
   0xb   :  { %416 = vmatpush3.bf16.msra.mxu0 %v461_v2  ;;  %453 = vmatpush3.bf16.msra.mxu1 %v461_v2  ;;  %v34_v55 = vld [vmem:[%s641_s1 + $0x78] sm:$0xff]  ;;  %v32_v61 = vld [vmem:[%s641_s1 + $0x68] sm:$0xff] }
   0xc   :  { %417 = vmatprep.subr.bf16.mxu0 %v462_v3  ;;  %446 = vmatprep.subr.bf16.mxu1 %v462_v3 }
   0xf   :  { %418 = vmatpush3.bf16.msra.mxu0 %v462_v3  ;;  %454 = vmatpush3.bf16.msra.mxu1 %v462_v3 }
  0x10   :  { %419 = vmatprep.subr.bf16.mxu0 %v463_v6  ;;  %447 = vmatprep.subr.bf16.mxu1 %v463_v6 }
  0x13   :  { %420 = vmatpush3.bf16.msra.mxu0 %v463_v6  ;;  %455 = vmatpush3.bf16.msra.mxu1 %v463_v6 }
  0x14   :  { %421 = vmatprep.subr.bf16.mxu0 %v464_v7  ;;  %448 = vmatprep.subr.bf16.mxu1 %v464_v7 }
  0x17   :  { %422 = vmatpush3.bf16.msra.mxu0 %v464_v7  ;;  %456 = vmatpush3.bf16.msra.mxu1 %v464_v7 }
  0x18   :  { %423 = vmatprep.subr.bf16.mxu0 %v465_v8  ;;  %449 = vmatprep.subr.bf16.mxu1 %v465_v8 }
  0x1b   :  { %424 = vmatpush3.bf16.msra.mxu0 %v465_v8  ;;  %457 = vmatpush3.bf16.msra.mxu1 %v465_v8 }
  0x1c   :  { %425 = vmatprep.subr.bf16.mxu0 %v466_v9  ;;  %450 = vmatprep.subr.bf16.mxu1 %v466_v9 }
  0x1f   :  { %426 = vmatpush3.bf16.msra.mxu0 %v466_v9  ;;  %458 = vmatpush3.bf16.msra.mxu1 %v466_v9 }
  0x22   :  { %428 = vmatmul.mubr.bf16.vlgmr.msra.gmra.mrb[0].mxu0 %v469_v10  ;;  %436 = vmatmul.mubr.bf16.vlgmr.msra.gmra.mrb[0].mxu1 %v470_v11 }
  0x23   :  { %431 = vmatprep.mubr.bf16.mxu0 %v471_v12  ;;  %439 = vmatprep.mubr.bf16.mxu1 %v472_v13 }
  0x2a   :  { %432 = vmatmul.mubr.bf16.gmra.mrb[4].mxu0 %v473_v14  ;;  %440 = vmatmul.mubr.bf16.gmra.mrb[4].mxu1 %v474_v15 }
  0xf5   :  { %v429_v20 = vpop.f32.mrb[0].mxu0  ;;  %v437_v21 = vpop.f32.mrb[0].mxu1 }
  0xf6   :  { %v294_v24 = vadd.f32 %v429_v20, %v21_v16  ;;  %v302_v25 = vadd.f32 %v437_v21, %v29_v17  ;;  %v229_v26 = vpop.f32.mrb[1].mxu0  ;;  %v261_v27 = vpop.f32.mrb[1].mxu1 }
  0xf7   :  { %v292_v30 = vadd.f32 %v229_v26, %v19_v18  ;;  %v300_v31 = vadd.f32 %v261_v27, %v27_v19  ;;  %v430_v32 = vpop.f32.mrb[2].mxu0  ;;  %v438_v33 = vpop.f32.mrb[2].mxu1 }
  0xf8   :  { %v345_v34 = vmax.f32 %v294_v24, 0.0  ;;  %v353_v35 = vmax.f32 %v302_v25, 0.0  ;;  %v295_v36 = vadd.f32 %v430_v32, %v22_v22  ;;  %v303_v37 = vadd.f32 %v438_v33, %v30_v23  ;;  %v232_v38 = vpop.f32.mrb[3].mxu0  ;;  %v264_v39 = vpop.f32.mrb[3].mxu1 }
  0xf9   :  { %v343_v40 = vmax.f32 %v292_v30, 0.0  ;;  %v351_v41 = vmax.f32 %v300_v31, 0.0  ;;  %v293_v42 = vadd.f32 %v232_v38, %v20_v28  ;;  %v301_v43 = vadd.f32 %v264_v39, %v28_v29 }
  0xfa   :  { %361 = vst [vmem:[%s642_s3 + $0x10] sm:$0xff] %v345_v34  ;;  %369 = vst [vmem:[%s642_s3 + $0x50] sm:$0xff] %v353_v35  ;;  %v346_v44 = vmax.f32 %v295_v36, 0.0  ;;  %v354_v45 = vmax.f32 %v303_v37, 0.0 }
  0xfb   :  { %359 = vst [vmem:[%s642_s3] sm:$0xff] %v343_v40  ;;  %367 = vst [vmem:[%s642_s3 + $0x40] sm:$0xff] %v351_v41  ;;  %v344_v46 = vmax.f32 %v293_v42, 0.0  ;;  %v352_v47 = vmax.f32 %v301_v43, 0.0 }
  0xfc   :  { %362 = vst [vmem:[%s642_s3 + $0x18] sm:$0xff] %v346_v44  ;;  %370 = vst [vmem:[%s642_s3 + $0x58] sm:$0xff] %v354_v45 }
  0xfd   :  { %360 = vst [vmem:[%s642_s3 + $0x8] sm:$0xff] %v344_v46  ;;  %368 = vst [vmem:[%s642_s3 + $0x48] sm:$0xff] %v352_v47  ;;  %v433_v52 = vpop.f32.mrb[4].mxu0  ;;  %v441_v53 = vpop.f32.mrb[4].mxu1 }
  0xfe   :  { %v298_v56 = vadd.f32 %v433_v52, %v25_v48  ;;  %v306_v57 = vadd.f32 %v441_v53, %v33_v49  ;;  %v245_v58 = vpop.f32.mrb[5].mxu0  ;;  %v277_v59 = vpop.f32.mrb[5].mxu1 }
  0xff   :  { %v296_v62 = vadd.f32 %v245_v58, %v23_v50  ;;  %v304_v63 = vadd.f32 %v277_v59, %v31_v51  ;;  %v434_v0 = vpop.f32.mrb[6].mxu0  ;;  %v442_v1 = vpop.f32.mrb[6].mxu1 }
 0x100   :  { %v349_v2 = vmax.f32 %v298_v56, 0.0  ;;  %v357_v3 = vmax.f32 %v306_v57, 0.0  ;;  %v299_v4 = vadd.f32 %v434_v0, %v26_v54  ;;  %v307_v5 = vadd.f32 %v442_v1, %v34_v55  ;;  %v248_v6 = vpop.f32.mrb[7].mxu0  ;;  %v280_v7 = vpop.f32.mrb[7].mxu1 }
 0x101   :  { %v347_v8 = vmax.f32 %v296_v62, 0.0  ;;  %v355_v9 = vmax.f32 %v304_v63, 0.0  ;;  %v297_v10 = vadd.f32 %v248_v6, %v24_v60  ;;  %v305_v11 = vadd.f32 %v280_v7, %v32_v61 }
 0x102   :  { %365 = vst [vmem:[%s642_s3 + $0x30] sm:$0xff] %v349_v2  ;;  %373 = vst [vmem:[%s642_s3 + $0x70] sm:$0xff] %v357_v3  ;;  %v350_v12 = vmax.f32 %v299_v4, 0.0  ;;  %v358_v13 = vmax.f32 %v307_v5, 0.0 }
 0x103   :  { %363 = vst [vmem:[%s642_s3 + $0x20] sm:$0xff] %v347_v8  ;;  %371 = vst [vmem:[%s642_s3 + $0x60] sm:$0xff] %v355_v9  ;;  %v348_v14 = vmax.f32 %v297_v10, 0.0  ;;  %v356_v15 = vmax.f32 %v305_v11, 0.0 }
 0x104   :  { %366 = vst [vmem:[%s642_s3 + $0x38] sm:$0xff] %v350_v12  ;;  %374 = vst [vmem:[%s642_s3 + $0x78] sm:$0xff] %v358_v13 }
 0x105   :  { %364 = vst [vmem:[%s642_s3 + $0x28] sm:$0xff] %v348_v14  ;;  %372 = vst [vmem:[%s642_s3 + $0x68] sm:$0xff] %v356_v15 }

// kernel: graph_conv_clf_forward.9
= control target key start
LH: loop header
LB: loop body
LE: loop exit
PB: predicated region body
PF: predicated region fallthrough
CT: control target
= control target key end

     0   :  { %11 = vsyncpa [#allocation4], 0  ;;  %s1522_s21 = smov [#allocation3]   ;;  %s2058_s0 = inlined_call_operand.vmem [shape: f32[8,128], index: 0, kind: input, shape index: {}]   ;;  %s2059_s1 = inlined_call_operand.vmem [shape: f32[128,128], index: 1, kind: input, shape index: {}]   ;;  %s2060_s2 = inlined_call_operand.vmem [shape: f32[128,1024], index: 2, kind: input, shape index: {}]   ;;  %s2061_s3 = inlined_call_operand.vmem [shape: f32[1,1024], index: 3, kind: input, shape index: {}]   ;;  %s2062_s4 = inlined_call_operand.hbm [shape: f32[1024,128], index: 4, kind: input, shape index: {}]   ;;  %s2063_s5 = inlined_call_operand.vmem [shape: f32[1,128], index: 5, kind: input, shape index: {}]   ;;  %s2064_s6 = inlined_call_operand.vmem [shape: f32[8,128], index: 6, kind: output, shape index: {}]  }
   0x1   :  { %s25_s22 = sshll.u32 %s1522_s21, 4  ;;  %s1498_s25 = scalar_lea.hbm %s2062_s4, 16384  ;;  %s26_s22 = int_to_ptr.vmem [resolvable:$true] %s25_s22 }
   0x2   :  { %p1499_p0 = scmp.ne.s32.totalorder %s2062_s4, %s1498_s25  ;;  %p1502_p1 = scmp.lt.u32.totalorder %s1498_s25, %s2062_s4 }
   0x4   :  { %p1504_p2 = pnand %p1502_p1, %p1499_p0 }
   0x6   :  { %1507 = shalt.err (!%p1504_p2)
}
   0x7   :  { %s1508_s30 = scalar_lea.vmem %s26_s22, 16384  ;;  %p1513_p4 = scmp.lt.s32.totalorder %s26_s22, %s26_s22 }
   0x8   :  { %p1509_p3 = scmp.ne.s32.totalorder %s26_s22, %s1508_s30  ;;  %p1514_p5 = scmp.lt.s32.totalorder %s1508_s30, %s1508_s30 }
   0xa   :  { %p1515_p6 = por %p1514_p5, %p1513_p4 }
   0xc   :  { %p1516_p7 = pnand %p1515_p6, %p1509_p3 }
   0xe   :  { %1519 = shalt.err (!%p1516_p7)
}
   0xf   :  { %s1523_s7 = smov 128   ;;  %s1524_s8 = smov 8  }
  0x10   :  { %31 = dma.hbm_to_vmem [thread:$0]  %s2062_s4, 16384, %s26_s22, [#allocation4], %s1523_s7, %s1523_s7, %s1524_s8  }
  0x11   :  { %1520 = dma.done.wait [#allocation4], 16384  }
  0x12   :  { %1521 = vsyncadd [#allocation4], 4294950912  ;;  %v1525_v0 = vmov 0.0|0.0   ;;  %vm1526_vm0 = vmmov 0   ;;  %v1527_v1 = vmov 0.0   ;;  %v44_v2 = vld [vmem:[%s2059_s1] sm:$0xff] }
  0x13   :  { %1212 = vmatprep.subr.bf16.mxu0 %v1525_v0  ;;  %1209 = vmatprep.mubr.msk.f32.mxu0 %vm1526_vm0, %v1527_v1  ;;  %v45_v3 = vld [vmem:[%s2059_s1 + $0x8] sm:$0xff]  ;;  %v46_v4 = vld [vmem:[%s2059_s1 + $0x10] sm:$0xff]  ;;  %v47_v6 = vld [vmem:[%s2059_s1 + $0x18] sm:$0xff] }
  0x14   :  { %370 = vmatprep.mubr.f32.mxu1 %v1527_v1  ;;  %v1213_v5 = vpack.c.bf16 %v45_v3, %v44_v2  ;;  %v1216_v7 = vpack.c.bf16 %v47_v6, %v46_v4  ;;  %v48_v8 = vld [vmem:[%s2059_s1 + $0x20] sm:$0xff]  ;;  %v49_v9 = vld [vmem:[%s2059_s1 + $0x28] sm:$0xff]  ;;  %v50_v13 = vld [vmem:[%s2059_s1 + $0x30] sm:$0xff] }
  0x15   :  { %v137_v10 = vld [vmem:[%s2060_s2 + $0x8] sm:$0xff]  ;;  %v1219_v12 = vpack.c.bf16 %v49_v9, %v48_v8  ;;  %v136_v15 = vld [vmem:[%s2060_s2] sm:$0xff]  ;;  %v51_v17 = vld [vmem:[%s2059_s1 + $0x38] sm:$0xff] }
  0x16   :  { %1214 = vmatpush3.bf16.msra.mxu0 %v1213_v5  ;;  %v145_v11 = vld [vmem:[%s2060_s2 + $0x48] sm:$0xff]  ;;  %v144_v16 = vld [vmem:[%s2060_s2 + $0x40] sm:$0xff]  ;;  %v1222_v24 = vpack.c.bf16 %v51_v17, %v50_v13  ;;  %v54_v37 = vld [vmem:[%s2059_s1 + $0x50] sm:$0xff] }
  0x17   :  { %1215 = vmatprep.subr.bf16.mxu0 %v1525_v0  ;;  %v1236_v14 = vpack.c.bf16 %v145_v11, %v137_v10  ;;  %v1238_v18 = vpack.c.bf16 %v144_v16, %v136_v15  ;;  %v153_v19 = vld [vmem:[%s2060_s2 + $0x88] sm:$0xff]  ;;  %v152_v22 = vld [vmem:[%s2060_s2 + $0x80] sm:$0xff]  ;;  %v55_v41 = vld [vmem:[%s2059_s1 + $0x58] sm:$0xff] }
  0x18   :  { %v161_v20 = vld [vmem:[%s2060_s2 + $0xc8] sm:$0xff]  ;;  %v160_v23 = vld [vmem:[%s2060_s2 + $0xc0] sm:$0xff]  ;;  %v1228_v45 = vpack.c.bf16 %v55_v41, %v54_v37  ;;  %v58_v55 = vld [vmem:[%s2059_s1 + $0x70] sm:$0xff] }
  0x19   :  { %1237 = vmatprep.subr.bf16.mxu1 %v1236_v14  ;;  %v1240_v21 = vpack.c.bf16 %v161_v20, %v153_v19  ;;  %v52_v25 = vld [vmem:[%s2059_s1 + $0x40] sm:$0xff]  ;;  %v1242_v26 = vpack.c.bf16 %v160_v23, %v152_v22  ;;  %v169_v27 = vld [vmem:[%s2060_s2 + $0x108] sm:$0xff]  ;;  %v59_v59 = vld [vmem:[%s2059_s1 + $0x78] sm:$0xff] }
  0x1a   :  { %1217 = vmatpush3.bf16.msra.mxu0 %v1216_v7  ;;  %1239 = vmatpush1.bf16.msra.mxu1 %v1238_v18  ;;  %v177_v28 = vld [vmem:[%s2060_s2 + $0x148] sm:$0xff]  ;;  %v168_v31 = vld [vmem:[%s2060_s2 + $0x100] sm:$0xff]  ;;  %v139_v62 = vld [vmem:[%s2060_s2 + $0x18] sm:$0xff]  ;;  %v1234_v3 = vpack.c.bf16 %v59_v59, %v58_v55 }
  0x1b   :  { %1218 = vmatprep.subr.bf16.mxu0 %v1525_v0  ;;  %1241 = vmatprep.subr.bf16.mxu1 %v1240_v21  ;;  %v53_v29 = vld [vmem:[%s2059_s1 + $0x48] sm:$0xff]  ;;  %v1244_v30 = vpack.c.bf16 %v177_v28, %v169_v27  ;;  %v176_v32 = vld [vmem:[%s2060_s2 + $0x140] sm:$0xff]  ;;  %v147_v63 = vld [vmem:[%s2060_s2 + $0x58] sm:$0xff] }
  0x1c   :  { %v185_v33 = vld [vmem:[%s2060_s2 + $0x188] sm:$0xff]  ;;  %v1246_v34 = vpack.c.bf16 %v176_v32, %v168_v31  ;;  %v1225_v36 = vpack.c.bf16 %v53_v29, %v52_v25  ;;  %v184_v39 = vld [vmem:[%s2060_s2 + $0x180] sm:$0xff]  ;;  %v138_v4 = vld [vmem:[%s2060_s2 + $0x10] sm:$0xff]  ;;  %v1268_v8 = vpack.c.bf16 %v147_v63, %v139_v62 }
  0x1d   :  { %v193_v35 = vld [vmem:[%s2060_s2 + $0x1c8] sm:$0xff]  ;;  %v192_v40 = vld [vmem:[%s2060_s2 + $0x1c0] sm:$0xff]  ;;  %v146_v9 = vld [vmem:[%s2060_s2 + $0x50] sm:$0xff] }
  0x1e   :  { %1220 = vmatpush3.bf16.msra.mxu0 %v1219_v12  ;;  %1243 = vmatpush1.bf16.msra.mxu1 %v1242_v26  ;;  %v1248_v38 = vpack.c.bf16 %v193_v35, %v185_v33  ;;  %v201_v42 = vld [vmem:[%s2060_s2 + $0x208] sm:$0xff]  ;;  %v1250_v44 = vpack.c.bf16 %v192_v40, %v184_v39  ;;  %v56_v46 = vld [vmem:[%s2059_s1 + $0x60] sm:$0xff]  ;;  %v155_v12 = vld [vmem:[%s2060_s2 + $0x98] sm:$0xff]  ;;  %v1270_v15 = vpack.c.bf16 %v146_v9, %v138_v4 }
  0x1f   :  { %1221 = vmatprep.subr.bf16.mxu0 %v1525_v0  ;;  %1245 = vmatprep.subr.bf16.mxu1 %v1244_v30  ;;  %v209_v43 = vld [vmem:[%s2060_s2 + $0x248] sm:$0xff]  ;;  %v200_v48 = vld [vmem:[%s2060_s2 + $0x200] sm:$0xff]  ;;  %v154_v20 = vld [vmem:[%s2060_s2 + $0x90] sm:$0xff] }
  0x20   :  { %v1252_v47 = vpack.c.bf16 %v209_v43, %v201_v42  ;;  %v208_v49 = vld [vmem:[%s2060_s2 + $0x240] sm:$0xff]  ;;  %v57_v50 = vld [vmem:[%s2059_s1 + $0x68] sm:$0xff]  ;;  %v162_v21 = vld [vmem:[%s2060_s2 + $0xd0] sm:$0xff] }
  0x21   :  { %v217_v51 = vld [vmem:[%s2060_s2 + $0x288] sm:$0xff]  ;;  %v1254_v53 = vpack.c.bf16 %v208_v49, %v200_v48  ;;  %v1231_v54 = vpack.c.bf16 %v57_v50, %v56_v46  ;;  %v216_v57 = vld [vmem:[%s2060_s2 + $0x280] sm:$0xff]  ;;  %v171_v22 = vld [vmem:[%s2060_s2 + $0x118] sm:$0xff]  ;;  %v1274_v25 = vpack.c.bf16 %v162_v21, %v154_v20 }
  0x22   :  { %1223 = vmatpush3.bf16.msra.mxu0 %v1222_v24  ;;  %1247 = vmatpush1.bf16.msra.mxu1 %v1246_v34  ;;  %v225_v52 = vld [vmem:[%s2060_s2 + $0x2c8] sm:$0xff]  ;;  %v224_v58 = vld [vmem:[%s2060_s2 + $0x2c0] sm:$0xff]  ;;  %v179_v23 = vld [vmem:[%s2060_s2 + $0x158] sm:$0xff] }
  0x23   :  { %1224 = vmatprep.subr.bf16.mxu0 %v1525_v0  ;;  %1249 = vmatprep.subr.bf16.mxu1 %v1248_v38  ;;  %v1256_v56 = vpack.c.bf16 %v225_v52, %v217_v51  ;;  %v233_v60 = vld [vmem:[%s2060_s2 + $0x308] sm:$0xff]  ;;  %v1258_v2 = vpack.c.bf16 %v224_v58, %v216_v57  ;;  %v232_v6 = vld [vmem:[%s2060_s2 + $0x300] sm:$0xff]  ;;  %v1276_v26 = vpack.c.bf16 %v179_v23, %v171_v22  ;;  %v170_v27 = vld [vmem:[%s2060_s2 + $0x110] sm:$0xff] }
  0x24   :  { %v241_v61 = vld [vmem:[%s2060_s2 + $0x348] sm:$0xff]  ;;  %v240_v7 = vld [vmem:[%s2060_s2 + $0x340] sm:$0xff]  ;;  %v178_v28 = vld [vmem:[%s2060_s2 + $0x150] sm:$0xff] }
  0x25   :  { %v1260_v5 = vpack.c.bf16 %v241_v61, %v233_v60  ;;  %v249_v10 = vld [vmem:[%s2060_s2 + $0x388] sm:$0xff]  ;;  %v1262_v13 = vpack.c.bf16 %v240_v7, %v232_v6  ;;  %v43_v14 = vld [vmem:[%s2058_s0] sm:$0xff]  ;;  %v187_v29 = vld [vmem:[%s2060_s2 + $0x198] sm:$0xff]  ;;  %v1278_v31 = vpack.c.bf16 %v178_v28, %v170_v27 }
  0x26   :  { %1226 = vmatpush3.bf16.msra.mxu0 %v1225_v36  ;;  %1251 = vmatpush1.bf16.msra.mxu1 %v1250_v44  ;;  %v257_v11 = vld [vmem:[%s2060_s2 + $0x3c8] sm:$0xff]  ;;  %v248_v17 = vld [vmem:[%s2060_s2 + $0x380] sm:$0xff]  ;;  %v195_v30 = vld [vmem:[%s2060_s2 + $0x1d8] sm:$0xff] }
  0x27   :  { %1227 = vmatprep.subr.bf16.mxu0 %v1525_v0  ;;  %1253 = vmatprep.subr.bf16.mxu1 %v1252_v47  ;;  %v1264_v16 = vpack.c.bf16 %v257_v11, %v249_v10  ;;  %v256_v18 = vld [vmem:[%s2060_s2 + $0x3c0] sm:$0xff]  ;;  %v1280_v32 = vpack.c.bf16 %v195_v30, %v187_v29  ;;  %v186_v33 = vld [vmem:[%s2060_s2 + $0x190] sm:$0xff]  ;;  %v203_v35 = vld [vmem:[%s2060_s2 + $0x218] sm:$0xff] }
  0x28   :  { %v1266_v24 = vpack.c.bf16 %v256_v18, %v248_v17  ;;  %v194_v34 = vld [vmem:[%s2060_s2 + $0x1d0] sm:$0xff]  ;;  %v211_v36 = vld [vmem:[%s2060_s2 + $0x258] sm:$0xff]  ;;  %v141_v60 = vld [vmem:[%s2060_s2 + $0x28] sm:$0xff] }
  0x29   :  { %v1282_v37 = vpack.c.bf16 %v194_v34, %v186_v33  ;;  %v1284_v38 = vpack.c.bf16 %v211_v36, %v203_v35  ;;  %v202_v39 = vld [vmem:[%s2060_s2 + $0x210] sm:$0xff]  ;;  %v219_v41 = vld [vmem:[%s2060_s2 + $0x298] sm:$0xff]  ;;  %v149_v61 = vld [vmem:[%s2060_s2 + $0x68] sm:$0xff] }
  0x2a   :  { %1229 = vmatpush3.bf16.msra.mxu0 %v1228_v45  ;;  %1255 = vmatpush1.bf16.msra.mxu1 %v1254_v53  ;;  %v210_v40 = vld [vmem:[%s2060_s2 + $0x250] sm:$0xff]  ;;  %v227_v42 = vld [vmem:[%s2060_s2 + $0x2d8] sm:$0xff]  ;;  %v1300_v63 = vpack.c.bf16 %v149_v61, %v141_v60  ;;  %v140_v4 = vld [vmem:[%s2060_s2 + $0x20] sm:$0xff] }
  0x2b   :  { %1230 = vmatprep.subr.bf16.mxu0 %v1525_v0  ;;  %1257 = vmatprep.subr.bf16.mxu1 %v1256_v56  ;;  %v1286_v43 = vpack.c.bf16 %v210_v40, %v202_v39  ;;  %v1288_v44 = vpack.c.bf16 %v227_v42, %v219_v41  ;;  %v218_v45 = vld [vmem:[%s2060_s2 + $0x290] sm:$0xff]  ;;  %v235_v47 = vld [vmem:[%s2060_s2 + $0x318] sm:$0xff]  ;;  %v165_v9 = vld [vmem:[%s2060_s2 + $0xe8] sm:$0xff] }
  0x2c   :  { %v226_v46 = vld [vmem:[%s2060_s2 + $0x2d0] sm:$0xff]  ;;  %v243_v48 = vld [vmem:[%s2060_s2 + $0x358] sm:$0xff]  ;;  %v181_v21 = vld [vmem:[%s2060_s2 + $0x168] sm:$0xff] }
  0x2d   :  { %v1290_v49 = vpack.c.bf16 %v226_v46, %v218_v45  ;;  %v1292_v50 = vpack.c.bf16 %v243_v48, %v235_v47  ;;  %v234_v51 = vld [vmem:[%s2060_s2 + $0x310] sm:$0xff]  ;;  %v251_v53 = vld [vmem:[%s2060_s2 + $0x398] sm:$0xff]  ;;  %v172_v27 = vld [vmem:[%s2060_s2 + $0x120] sm:$0xff] }
  0x2e   :  { %1232 = vmatpush3.bf16.msra.mxu0 %v1231_v54  ;;  %1259 = vmatpush1.bf16.msra.mxu1 %v1258_v2  ;;  %v242_v52 = vld [vmem:[%s2060_s2 + $0x350] sm:$0xff]  ;;  %v259_v54 = vld [vmem:[%s2060_s2 + $0x3d8] sm:$0xff]  ;;  %v180_v28 = vld [vmem:[%s2060_s2 + $0x160] sm:$0xff] }
  0x2f   :  { %1233 = vmatprep.subr.bf16.mxu0 %v1525_v0  ;;  %v163_v0 = vld [vmem:[%s2060_s2 + $0xd8] sm:$0xff]  ;;  %1261 = vmatprep.subr.bf16.mxu1 %v1260_v5  ;;  %v1294_v55 = vpack.c.bf16 %v242_v52, %v234_v51  ;;  %v1296_v56 = vpack.c.bf16 %v259_v54, %v251_v53  ;;  %v250_v57 = vld [vmem:[%s2060_s2 + $0x390] sm:$0xff]  ;;  %v148_v5 = vld [vmem:[%s2060_s2 + $0x60] sm:$0xff] }
  0x30   :  { %v1272_v19 = vpack.c.bf16 %v163_v0, %v155_v12  ;;  %v258_v58 = vld [vmem:[%s2060_s2 + $0x3d0] sm:$0xff]  ;;  %v143_v62 = vld [vmem:[%s2060_s2 + $0x38] sm:$0xff]  ;;  %v1302_v12 = vpack.c.bf16 %v148_v5, %v140_v4  ;;  %v189_v33 = vld [vmem:[%s2060_s2 + $0x1a8] sm:$0xff] }
  0x31   :  { %v1298_v59 = vpack.c.bf16 %v258_v58, %v250_v57  ;;  %v151_v2 = vld [vmem:[%s2060_s2 + $0x78] sm:$0xff]  ;;  %v142_v6 = vld [vmem:[%s2060_s2 + $0x30] sm:$0xff]  ;;  %v197_v34 = vld [vmem:[%s2060_s2 + $0x1e8] sm:$0xff] }
  0x32   :  { %1235 = vmatpush3.bf16.msra.mxu0 %v1234_v3  ;;  %1263 = vmatpush1.bf16.msra.mxu1 %v1262_v13  ;;  %v1332_v3 = vpack.c.bf16 %v151_v2, %v143_v62  ;;  %v150_v7 = vld [vmem:[%s2060_s2 + $0x70] sm:$0xff]  ;;  %v159_v10 = vld [vmem:[%s2060_s2 + $0xb8] sm:$0xff]  ;;  %v156_v13 = vld [vmem:[%s2060_s2 + $0xa0] sm:$0xff]  ;;  %v1312_v41 = vpack.c.bf16 %v197_v34, %v189_v33 }
  0x33   :  { %1269 = vmatprep.subr.bf16.mxu0 %v1268_v8  ;;  %1265 = vmatprep.subr.bf16.mxu1 %v1264_v16  ;;  %v157_v8 = vld [vmem:[%s2060_s2 + $0xa8] sm:$0xff]  ;;  %v167_v11 = vld [vmem:[%s2060_s2 + $0xf8] sm:$0xff]  ;;  %v1334_v0 = vpack.c.bf16 %v150_v7, %v142_v6  ;;  %v158_v17 = vld [vmem:[%s2060_s2 + $0xb0] sm:$0xff] }
  0x34   :  { %v1336_v16 = vpack.c.bf16 %v167_v11, %v159_v10  ;;  %v166_v18 = vld [vmem:[%s2060_s2 + $0xf0] sm:$0xff]  ;;  %v175_v22 = vld [vmem:[%s2060_s2 + $0x138] sm:$0xff]  ;;  %v188_v39 = vld [vmem:[%s2060_s2 + $0x1a0] sm:$0xff] }
  0x35   :  { %1210 = vmatmul.mubr.f32.vlgmr.msra.gmra.mrb[0].mxu0 %v43_v14  ;;  %v164_v14 = vld [vmem:[%s2060_s2 + $0xe0] sm:$0xff]  ;;  %v183_v23 = vld [vmem:[%s2060_s2 + $0x178] sm:$0xff]  ;;  %v213_v45 = vld [vmem:[%s2060_s2 + $0x268] sm:$0xff] }
  0x36   :  { %1271 = vmatpush1.bf16.msra.mxu0 %v1270_v15  ;;  %441 = vmatprep.mubr.f32.mxu0 %v1527_v1  ;;  %v1304_v15 = vpack.c.bf16 %v165_v9, %v157_v8  ;;  %v1340_v30 = vpack.c.bf16 %v183_v23, %v175_v22  ;;  %v191_v35 = vld [vmem:[%s2060_s2 + $0x1b8] sm:$0xff]  ;;  %v196_v40 = vld [vmem:[%s2060_s2 + $0x1e0] sm:$0xff]  ;;  %v206_v54 = vld [vmem:[%s2060_s2 + $0x230] sm:$0xff] }
  0x37   :  { %1273 = vmatprep.subr.bf16.mxu0 %v1272_v19  ;;  %1267 = vmatpush1.bf16.msra.mxu1 %v1266_v24  ;;  %v173_v19 = vld [vmem:[%s2060_s2 + $0x128] sm:$0xff]  ;;  %v199_v36 = vld [vmem:[%s2060_s2 + $0x1f8] sm:$0xff]  ;;  %v1314_v48 = vpack.c.bf16 %v196_v40, %v188_v39  ;;  %v212_v51 = vld [vmem:[%s2060_s2 + $0x260] sm:$0xff] }
  0x38   :  { %1301 = vmatprep.subr.bf16.mxu1 %v1300_v63  ;;  %v1308_v29 = vpack.c.bf16 %v181_v21, %v173_v19  ;;  %v1344_v42 = vpack.c.bf16 %v199_v36, %v191_v35  ;;  %v207_v46 = vld [vmem:[%s2060_s2 + $0x238] sm:$0xff]  ;;  %v229_v57 = vld [vmem:[%s2060_s2 + $0x2e8] sm:$0xff]  ;;  %v220_v62 = vld [vmem:[%s2060_s2 + $0x2a0] sm:$0xff] }
  0x39   :  { %v215_v47 = vld [vmem:[%s2060_s2 + $0x278] sm:$0xff]  ;;  %v228_v63 = vld [vmem:[%s2060_s2 + $0x2e0] sm:$0xff]  ;;  %v222_v4 = vld [vmem:[%s2060_s2 + $0x2b0] sm:$0xff] }
  0x3a   :  { %1275 = vmatpush1.bf16.msra.mxu0 %v1274_v25  ;;  %v1306_v25 = vpack.c.bf16 %v164_v14, %v156_v13  ;;  %v1348_v53 = vpack.c.bf16 %v215_v47, %v207_v46  ;;  %v223_v58 = vld [vmem:[%s2060_s2 + $0x2b8] sm:$0xff]  ;;  %v230_v5 = vld [vmem:[%s2060_s2 + $0x2f0] sm:$0xff]  ;;  %v237_v6 = vld [vmem:[%s2060_s2 + $0x328] sm:$0xff]  ;;  %v1322_v10 = vpack.c.bf16 %v228_v63, %v220_v62 }
  0x3b   :  { %1277 = vmatprep.subr.bf16.mxu0 %v1276_v26  ;;  %v1338_v26 = vpack.c.bf16 %v166_v18, %v158_v17  ;;  %v245_v7 = vld [vmem:[%s2060_s2 + $0x368] sm:$0xff]  ;;  %v239_v8 = vld [vmem:[%s2060_s2 + $0x338] sm:$0xff]  ;;  %v1354_v11 = vpack.c.bf16 %v230_v5, %v222_v4  ;;  %v598_v36 = vld [vmem:[#allocation3] sm:$0xff] }
  0x3c   :  { %v247_v9 = vld [vmem:[%s2060_s2 + $0x378] sm:$0xff]  ;;  %v1324_v13 = vpack.c.bf16 %v245_v7, %v237_v6  ;;  %v253_v17 = vld [vmem:[%s2060_s2 + $0x3a8] sm:$0xff]  ;;  %v630_v40 = vld [vmem:[#allocation3 + $0x100] sm:$0xff] }
  0x3d   :  { %v1356_v14 = vpack.c.bf16 %v247_v9, %v239_v8  ;;  %v261_v18 = vld [vmem:[%s2060_s2 + $0x3e8] sm:$0xff]  ;;  %v255_v19 = vld [vmem:[%s2060_s2 + $0x3b8] sm:$0xff]  ;;  %v600_v47 = vld [vmem:[#allocation3 + $0x10] sm:$0xff] }
  0x3e   :  { %1279 = vmatpush1.bf16.msra.mxu0 %v1278_v31  ;;  %v174_v31 = vld [vmem:[%s2060_s2 + $0x130] sm:$0xff]  ;;  %v263_v21 = vld [vmem:[%s2060_s2 + $0x3f8] sm:$0xff]  ;;  %v647_v33 = vld [vmem:[#allocation3 + $0x188] sm:$0xff] }
  0x3f   :  { %1281 = vmatprep.subr.bf16.mxu0 %v1280_v32  ;;  %v182_v32 = vld [vmem:[%s2060_s2 + $0x170] sm:$0xff]  ;;  %v634_v63 = vld [vmem:[#allocation3 + $0x120] sm:$0xff]  ;;  %v621_v4 = vld [vmem:[#allocation3 + $0xb8] sm:$0xff] }
  0x40   :  { %v652_v5 = vld [vmem:[#allocation3 + $0x1b0] sm:$0xff]  ;;  %v653_v6 = vld [vmem:[#allocation3 + $0x1b8] sm:$0xff] }
  0x41   :  { %v604_v8 = vld [vmem:[#allocation3 + $0x30] sm:$0xff]  ;;  %v605_v9 = vld [vmem:[#allocation3 + $0x38] sm:$0xff] }
  0x42   :  { %1283 = vmatpush1.bf16.msra.mxu0 %v1282_v37  ;;  %v1310_v37 = vpack.c.bf16 %v180_v28, %v172_v27  ;;  %v1360_v27 = vpack.c.bf16 %v263_v21, %v255_v19  ;;  %v254_v28 = vld [vmem:[%s2060_s2 + $0x3b0] sm:$0xff]  ;;  %v606_v19 = vld [vmem:[#allocation3 + $0x40] sm:$0xff]  ;;  %v607_v21 = vld [vmem:[#allocation3 + $0x48] sm:$0xff] }
  0x43   :  { %1285 = vmatprep.subr.bf16.mxu0 %v1284_v38  ;;  %v1342_v38 = vpack.c.bf16 %v182_v32, %v174_v31  ;;  %v615_v31 = vld [vmem:[#allocation3 + $0x88] sm:$0xff]  ;;  %v646_v32 = vld [vmem:[#allocation3 + $0x180] sm:$0xff] }
  0x44   :  { %v1396_v39 = vpack.c.bf16 %v647_v33, %v646_v32  ;;  %v608_v32 = vld [vmem:[#allocation3 + $0x50] sm:$0xff]  ;;  %v609_v33 = vld [vmem:[#allocation3 + $0x58] sm:$0xff] }
  0x46   :  { %1287 = vmatpush1.bf16.msra.mxu0 %v1286_v43  ;;  %v198_v43 = vld [vmem:[%s2060_s2 + $0x1f0] sm:$0xff] }
  0x47   :  { %1289 = vmatprep.subr.bf16.mxu0 %v1288_v44  ;;  %v205_v44 = vld [vmem:[%s2060_s2 + $0x228] sm:$0xff] }
  0x48   :  { %v1316_v52 = vpack.c.bf16 %v213_v45, %v205_v44  ;;  %v649_v44 = vld [vmem:[#allocation3 + $0x198] sm:$0xff] }
  0x4a   :  { %1291 = vmatpush1.bf16.msra.mxu0 %v1290_v49 }
  0x4b   :  { %1293 = vmatprep.subr.bf16.mxu0 %v1292_v50  ;;  %v204_v50 = vld [vmem:[%s2060_s2 + $0x220] sm:$0xff] }
  0x4c   :  { %v1318_v60 = vpack.c.bf16 %v212_v51, %v204_v50  ;;  %v632_v51 = vld [vmem:[#allocation3 + $0x110] sm:$0xff] }
  0x4e   :  { %1295 = vmatpush1.bf16.msra.mxu0 %v1294_v55  ;;  %v214_v55 = vld [vmem:[%s2060_s2 + $0x270] sm:$0xff] }
  0x4f   :  { %1297 = vmatprep.subr.bf16.mxu0 %v1296_v56  ;;  %v221_v56 = vld [vmem:[%s2060_s2 + $0x2a8] sm:$0xff]  ;;  %v1350_v61 = vpack.c.bf16 %v214_v55, %v206_v54  ;;  %v650_v55 = vld [vmem:[#allocation3 + $0x1a0] sm:$0xff] }
  0x50   :  { %v1320_v2 = vpack.c.bf16 %v229_v57, %v221_v56  ;;  %v619_v54 = vld [vmem:[#allocation3 + $0xa8] sm:$0xff] }
  0x51   :  { %v651_v56 = vld [vmem:[#allocation3 + $0x1a8] sm:$0xff] }
  0x52   :  { %1299 = vmatpush1.bf16.msra.mxu0 %v1298_v59  ;;  %v231_v59 = vld [vmem:[%s2060_s2 + $0x2f8] sm:$0xff]  ;;  %v1404_v62 = vpack.c.bf16 %v651_v56, %v650_v55  ;;  %v612_v56 = vld [vmem:[#allocation3 + $0x70] sm:$0xff] }
  0x53   :  { %1333 = vmatprep.subr.bf16.mxu0 %v1332_v3  ;;  %v1352_v3 = vpack.c.bf16 %v231_v59, %v223_v58  ;;  %v602_v59 = vld [vmem:[#allocation3 + $0x20] sm:$0xff]  ;;  %v661_v55 = vld [vmem:[#allocation3 + $0x1f8] sm:$0xff] }
 0x108   :  { %v1880_v20 = vpop.f32.mrb[0].mxu0 }
 0x109   :  { %v1211_v24 = vpop.f32.mrb[1].mxu0  ;;  %371 = vmatmul.mubr.f32.vlgmr.msra.gmra.mrb[0].mxu1 %v1880_v20  ;;  %442 = vmatmul.mubr.f32.vlgmr.msra.gmra.mrb[2].mxu0 %v1880_v20 }
 0x10a   :  { %1303 = vmatpush1.bf16.msra.mxu1 %v1302_v12  ;;  %1335 = vmatpush1.bf16.msra.mxu0 %v1334_v0  ;;  %v236_v12 = vld [vmem:[%s2060_s2 + $0x320] sm:$0xff] }
 0x10b   :  { %1305 = vmatprep.subr.bf16.mxu1 %v1304_v15  ;;  %1337 = vmatprep.subr.bf16.mxu0 %v1336_v16  ;;  %v244_v0 = vld [vmem:[%s2060_s2 + $0x360] sm:$0xff]  ;;  %v238_v15 = vld [vmem:[%s2060_s2 + $0x330] sm:$0xff] }
 0x10c   :  { %512 = vmatprep.mubr.f32.mxu1 %v1527_v1  ;;  %583 = vmatprep.mubr.f32.mxu0 %v1527_v1  ;;  %v190_v1 = vld [vmem:[%s2060_s2 + $0x1b0] sm:$0xff]  ;;  %v1326_v22 = vpack.c.bf16 %v244_v0, %v236_v12  ;;  %v252_v24 = vld [vmem:[%s2060_s2 + $0x3a0] sm:$0xff]  ;;  %v637_v0 = vld [vmem:[#allocation3 + $0x138] sm:$0xff] }
 0x10d   :  { %v1346_v49 = vpack.c.bf16 %v198_v43, %v190_v1  ;;  %v246_v16 = vld [vmem:[%s2060_s2 + $0x370] sm:$0xff]  ;;  %v617_v1 = vld [vmem:[#allocation3 + $0x98] sm:$0xff] }
 0x10e   :  { %1307 = vmatpush1.bf16.msra.mxu1 %v1306_v25  ;;  %1339 = vmatpush1.bf16.msra.mxu0 %v1338_v26  ;;  %v1358_v23 = vpack.c.bf16 %v246_v16, %v238_v15  ;;  %v260_v25 = vld [vmem:[%s2060_s2 + $0x3e0] sm:$0xff]  ;;  %v1328_v26 = vpack.c.bf16 %v261_v18, %v253_v17  ;;  %v648_v43 = vld [vmem:[#allocation3 + $0x190] sm:$0xff]  ;;  %v655_v16 = vld [vmem:[#allocation3 + $0x1c8] sm:$0xff]  ;;  %v1378_v17 = vpack.c.bf16 %v605_v9, %v604_v8 }
 0x10f   :  { %1309 = vmatprep.subr.bf16.mxu1 %v1308_v29  ;;  %1341 = vmatprep.subr.bf16.mxu0 %v1340_v30  ;;  %v262_v29 = vld [vmem:[%s2060_s2 + $0x3f0] sm:$0xff]  ;;  %v614_v30 = vld [vmem:[#allocation3 + $0x80] sm:$0xff]  ;;  %v1330_v34 = vpack.c.bf16 %v260_v25, %v252_v24  ;;  %v1400_v50 = vpack.c.bf16 %v649_v44, %v648_v43  ;;  %v639_v25 = vld [vmem:[#allocation3 + $0x148] sm:$0xff] }
 0x110   :  { %v1362_v35 = vpack.c.bf16 %v262_v29, %v254_v28  ;;  %v636_v12 = vld [vmem:[#allocation3 + $0x130] sm:$0xff]  ;;  %v654_v15 = vld [vmem:[#allocation3 + $0x1c0] sm:$0xff]  ;;  %v657_v29 = vld [vmem:[#allocation3 + $0x1d8] sm:$0xff] }
 0x111   :  { %v1410_v18 = vpack.c.bf16 %v637_v0, %v636_v12  ;;  %v638_v24 = vld [vmem:[#allocation3 + $0x140] sm:$0xff]  ;;  %v656_v28 = vld [vmem:[#allocation3 + $0x1d0] sm:$0xff] }
 0x112   :  { %1311 = vmatpush1.bf16.msra.mxu1 %v1310_v37  ;;  %1343 = vmatpush1.bf16.msra.mxu0 %v1342_v38  ;;  %v599_v37 = vld [vmem:[#allocation3 + $0x8] sm:$0xff]  ;;  %v1364_v38 = vpack.c.bf16 %v615_v31, %v614_v30  ;;  %v1382_v30 = vpack.c.bf16 %v607_v21, %v606_v19  ;;  %v1414_v31 = vpack.c.bf16 %v639_v25, %v638_v24  ;;  %v610_v43 = vld [vmem:[#allocation3 + $0x60] sm:$0xff] }
 0x113   :  { %1313 = vmatprep.subr.bf16.mxu1 %v1312_v41  ;;  %1345 = vmatprep.subr.bf16.mxu0 %v1344_v42  ;;  %v631_v41 = vld [vmem:[#allocation3 + $0x108] sm:$0xff]  ;;  %v616_v42 = vld [vmem:[#allocation3 + $0x90] sm:$0xff]  ;;  %v1366_v45 = vpack.c.bf16 %v599_v37, %v598_v36  ;;  %v641_v37 = vld [vmem:[#allocation3 + $0x158] sm:$0xff] }
 0x114   :  { %v1398_v46 = vpack.c.bf16 %v631_v41, %v630_v40  ;;  %v640_v36 = vld [vmem:[#allocation3 + $0x150] sm:$0xff]  ;;  %v658_v40 = vld [vmem:[#allocation3 + $0x1e0] sm:$0xff]  ;;  %v659_v41 = vld [vmem:[#allocation3 + $0x1e8] sm:$0xff] }
 0x115   :  { %v663_v19 = vld [vmem:[#allocation3 + $0x208] sm:$0xff]  ;;  %v694_v25 = vld [vmem:[#allocation3 + $0x300] sm:$0xff] }
 0x116   :  { %1315 = vmatpush1.bf16.msra.mxu1 %v1314_v48  ;;  %1347 = vmatpush1.bf16.msra.mxu0 %v1346_v49  ;;  %v601_v48 = vld [vmem:[#allocation3 + $0x18] sm:$0xff]  ;;  %v1368_v49 = vpack.c.bf16 %v617_v1, %v616_v42  ;;  %v1386_v42 = vpack.c.bf16 %v609_v33, %v608_v32  ;;  %v1418_v1 = vpack.c.bf16 %v641_v37, %v640_v36  ;;  %v664_v37 = vld [vmem:[#allocation3 + $0x210] sm:$0xff] }
 0x117   :  { %1317 = vmatprep.subr.bf16.mxu1 %v1316_v52  ;;  %1349 = vmatprep.subr.bf16.mxu0 %v1348_v53  ;;  %v633_v52 = vld [vmem:[#allocation3 + $0x118] sm:$0xff]  ;;  %v618_v53 = vld [vmem:[#allocation3 + $0xa0] sm:$0xff]  ;;  %v1370_v57 = vpack.c.bf16 %v601_v48, %v600_v47  ;;  %v643_v48 = vld [vmem:[#allocation3 + $0x168] sm:$0xff] }
 0x118   :  { %v1402_v58 = vpack.c.bf16 %v633_v52, %v632_v51  ;;  %v642_v47 = vld [vmem:[#allocation3 + $0x160] sm:$0xff]  ;;  %v628_v51 = vld [vmem:[#allocation3 + $0xf0] sm:$0xff]  ;;  %v629_v52 = vld [vmem:[#allocation3 + $0xf8] sm:$0xff] }
 0x119   :  { %v713_v32 = vld [vmem:[#allocation3 + $0x398] sm:$0xff] }
 0x11a   :  { %1319 = vmatpush1.bf16.msra.mxu1 %v1318_v60  ;;  %1351 = vmatpush1.bf16.msra.mxu0 %v1350_v61  ;;  %v603_v60 = vld [vmem:[#allocation3 + $0x28] sm:$0xff]  ;;  %v1372_v61 = vpack.c.bf16 %v619_v54, %v618_v53  ;;  %v660_v53 = vld [vmem:[#allocation3 + $0x1f0] sm:$0xff]  ;;  %v1392_v54 = vpack.c.bf16 %v629_v52, %v628_v51 }
 0x11b   :  { %1321 = vmatprep.subr.bf16.mxu1 %v1320_v2  ;;  %1353 = vmatprep.subr.bf16.mxu0 %v1352_v3  ;;  %v635_v2 = vld [vmem:[#allocation3 + $0x128] sm:$0xff]  ;;  %v620_v3 = vld [vmem:[#allocation3 + $0xb0] sm:$0xff]  ;;  %v1374_v7 = vpack.c.bf16 %v603_v60, %v602_v59 }
 0x11c   :  { %v644_v60 = vld [vmem:[#allocation3 + $0x170] sm:$0xff]  ;;  %v667_v51 = vld [vmem:[#allocation3 + $0x228] sm:$0xff] }
 0x11e   :  { %1323 = vmatpush1.bf16.msra.mxu1 %v1322_v10  ;;  %1355 = vmatpush1.bf16.msra.mxu0 %v1354_v11  ;;  %v1376_v10 = vpack.c.bf16 %v621_v4, %v620_v3  ;;  %v1408_v11 = vpack.c.bf16 %v653_v6, %v652_v5  ;;  %v710_v3 = vld [vmem:[#allocation3 + $0x380] sm:$0xff]  ;;  %v711_v5 = vld [vmem:[#allocation3 + $0x388] sm:$0xff] }
 0x11f   :  { %1325 = vmatprep.subr.bf16.mxu1 %v1324_v13  ;;  %1357 = vmatprep.subr.bf16.mxu0 %v1356_v14  ;;  %v622_v13 = vld [vmem:[#allocation3 + $0xc0] sm:$0xff]  ;;  %v623_v14 = vld [vmem:[#allocation3 + $0xc8] sm:$0xff]  ;;  %v1460_v6 = vpack.c.bf16 %v711_v5, %v710_v3  ;;  %v701_v5 = vld [vmem:[#allocation3 + $0x338] sm:$0xff] }
 0x122   :  { %1327 = vmatpush1.bf16.msra.mxu1 %v1326_v22  ;;  %1359 = vmatpush1.bf16.msra.mxu0 %v1358_v23  ;;  %v1380_v22 = vpack.c.bf16 %v623_v14, %v622_v13  ;;  %v1412_v23 = vpack.c.bf16 %v655_v16, %v654_v15 }
 0x123   :  { %1329 = vmatprep.subr.bf16.mxu1 %v1328_v26  ;;  %1361 = vmatprep.subr.bf16.mxu0 %v1360_v27  ;;  %v624_v26 = vld [vmem:[#allocation3 + $0xd0] sm:$0xff]  ;;  %v625_v27 = vld [vmem:[#allocation3 + $0xd8] sm:$0xff] }
 0x126   :  { %1331 = vmatpush1.bf16.msra.mxu1 %v1330_v34  ;;  %1363 = vmatpush1.bf16.msra.mxu0 %v1362_v35  ;;  %v1384_v34 = vpack.c.bf16 %v625_v27, %v624_v26  ;;  %v1416_v35 = vpack.c.bf16 %v657_v29, %v656_v28  ;;  %v695_v26 = vld [vmem:[#allocation3 + $0x308] sm:$0xff]  ;;  %v680_v27 = vld [vmem:[#allocation3 + $0x290] sm:$0xff] }
 0x127   :  { %1365 = vmatprep.subr.bf16.mxu1 %v1364_v38  ;;  %1397 = vmatprep.subr.bf16.mxu0 %v1396_v39  ;;  %v626_v38 = vld [vmem:[#allocation3 + $0xe0] sm:$0xff]  ;;  %v627_v39 = vld [vmem:[#allocation3 + $0xe8] sm:$0xff]  ;;  %v1462_v36 = vpack.c.bf16 %v695_v26, %v694_v25  ;;  %v672_v25 = vld [vmem:[#allocation3 + $0x250] sm:$0xff] }
 0x128   :  { %v1388_v44 = vpack.c.bf16 %v627_v39, %v626_v38  ;;  %v665_v38 = vld [vmem:[#allocation3 + $0x218] sm:$0xff] }
 0x129   :  { %513 = vmatmul.mubr.f32.vlgmr.msra.gmra.mrb[2].mxu1 %v1880_v20  ;;  %584 = vmatmul.mubr.f32.vlgmr.msra.gmra.mrb[4].mxu0 %v1880_v20  ;;  %v1406_v20 = vpack.c.bf16 %v635_v2, %v634_v63  ;;  %v678_v63 = vld [vmem:[#allocation3 + $0x280] sm:$0xff]  ;;  %v679_v2 = vld [vmem:[#allocation3 + $0x288] sm:$0xff]  ;;  %v673_v26 = vld [vmem:[#allocation3 + $0x258] sm:$0xff] }
 0x12a   :  { %1367 = vmatpush3.bf16.msra.mxu1 %v1366_v45  ;;  %1399 = vmatpush3.bf16.msra.mxu0 %v1398_v46  ;;  %v1420_v45 = vpack.c.bf16 %v659_v41, %v658_v40  ;;  %v611_v46 = vld [vmem:[#allocation3 + $0x68] sm:$0xff]  ;;  %v1428_v4 = vpack.c.bf16 %v679_v2, %v678_v63  ;;  %v669_v63 = vld [vmem:[#allocation3 + $0x238] sm:$0xff] }
 0x12b   :  { %1369 = vmatprep.subr.bf16.mxu1 %v1368_v49  ;;  %1401 = vmatprep.subr.bf16.mxu0 %v1400_v50  ;;  %v1390_v49 = vpack.c.bf16 %v611_v46, %v610_v43  ;;  %v1422_v50 = vpack.c.bf16 %v643_v48, %v642_v47  ;;  %v697_v43 = vld [vmem:[#allocation3 + $0x318] sm:$0xff]  ;;  %v714_v46 = vld [vmem:[#allocation3 + $0x3a0] sm:$0xff]  ;;  %v715_v47 = vld [vmem:[#allocation3 + $0x3a8] sm:$0xff]  ;;  %v1434_v48 = vpack.c.bf16 %v665_v38, %v664_v37 }
 0x12c   :  { %v674_v38 = vld [vmem:[#allocation3 + $0x260] sm:$0xff] }
 0x12e   :  { %1371 = vmatpush3.bf16.msra.mxu1 %v1370_v57  ;;  %1403 = vmatpush3.bf16.msra.mxu0 %v1402_v58  ;;  %v613_v57 = vld [vmem:[#allocation3 + $0x78] sm:$0xff]  ;;  %v1424_v58 = vpack.c.bf16 %v661_v55, %v660_v53  ;;  %v1468_v53 = vpack.c.bf16 %v715_v47, %v714_v46  ;;  %v699_v55 = vld [vmem:[#allocation3 + $0x328] sm:$0xff] }
 0x12f   :  { %1373 = vmatprep.subr.bf16.mxu1 %v1372_v61  ;;  %1405 = vmatprep.subr.bf16.mxu0 %v1404_v62  ;;  %v1394_v59 = vpack.c.bf16 %v613_v57, %v612_v56  ;;  %v645_v61 = vld [vmem:[#allocation3 + $0x178] sm:$0xff]  ;;  %v684_v56 = vld [vmem:[#allocation3 + $0x2b0] sm:$0xff] }
 0x130   :  { %v1426_v62 = vpack.c.bf16 %v645_v61, %v644_v60  ;;  %v685_v57 = vld [vmem:[#allocation3 + $0x2b8] sm:$0xff] }
 0x131   :  { %v1440_v2 = vpack.c.bf16 %v685_v57, %v684_v56  ;;  %v693_v47 = vld [vmem:[#allocation3 + $0x2f8] sm:$0xff] }
 0x132   :  { %1375 = vmatpush3.bf16.msra.mxu1 %v1374_v7  ;;  %1407 = vmatpush3.bf16.msra.mxu0 %v1406_v20  ;;  %v266_v7 = vlaneseq  ;;  %v677_v57 = vld [vmem:[#allocation3 + $0x278] sm:$0xff] }
 0x133   :  { %1377 = vmatprep.subr.bf16.mxu1 %v1376_v10  ;;  %1409 = vmatprep.subr.bf16.mxu0 %v1408_v11  ;;  %v2036_v10 = vld [vmem:[%s2061_s3] sm:$0xff] }
 0x134   :  { %v2029_v20 = vshrl.u32 %v266_v7, 7  ;;  %v687_v7 = vld [vmem:[#allocation3 + $0x2c8] sm:$0xff] }
 0x136   :  { %1379 = vmatpush3.bf16.msra.mxu1 %v1378_v17  ;;  %1411 = vmatpush3.bf16.msra.mxu0 %v1410_v18  ;;  %v268_v8 = vsub.s32 0, %v2029_v20  ;;  %v276_v9 = vsub.s32 2, %v2029_v20  ;;  %v272_v11 = vsub.s32 1, %v2029_v20  ;;  %v280_v12 = vsub.s32 3, %v2029_v20  ;;  %v662_v18 = vld [vmem:[#allocation3 + $0x200] sm:$0xff] }
 0x137   :  { %1381 = vmatprep.subr.bf16.mxu1 %v1380_v22  ;;  %1413 = vmatprep.subr.bf16.mxu0 %v1412_v23  ;;  %v284_v37 = vsub.s32 4, %v2029_v20  ;;  %v296_v46 = vsub.s32 7, %v2029_v20 }
 0x138   :  { %v269_v0 = vrot.slane %v2036_v10, %v268_v8  ;;  %v277_v13 = vrot.slane %v2036_v10, %v276_v9  ;;  %v273_v14 = vrot.slane %v2036_v10, %v272_v11  ;;  %v281_v15 = vrot.slane %v2036_v10, %v280_v12  ;;  %v718_v8 = vld [vmem:[#allocation3 + $0x3c0] sm:$0xff]  ;;  %v719_v9 = vld [vmem:[#allocation3 + $0x3c8] sm:$0xff] }
 0x13a   :  { %1383 = vmatpush3.bf16.msra.mxu1 %v1382_v30  ;;  %1415 = vmatpush3.bf16.msra.mxu0 %v1414_v31  ;;  %v681_v30 = vld [vmem:[#allocation3 + $0x298] sm:$0xff]  ;;  %v712_v31 = vld [vmem:[#allocation3 + $0x390] sm:$0xff] }
 0x13b   :  { %1385 = vmatprep.subr.bf16.mxu1 %v1384_v34  ;;  %1417 = vmatprep.subr.bf16.mxu0 %v1416_v35  ;;  %v1430_v35 = vpack.c.bf16 %v663_v19, %v662_v18  ;;  %v1432_v41 = vpack.c.bf16 %v681_v30, %v680_v27  ;;  %v688_v18 = vld [vmem:[#allocation3 + $0x2d0] sm:$0xff]  ;;  %v689_v19 = vld [vmem:[#allocation3 + $0x2d8] sm:$0xff] }
 0x13c   :  { %v1448_v27 = vpack.c.bf16 %v689_v19, %v688_v18  ;;  %v705_v30 = vld [vmem:[#allocation3 + $0x358] sm:$0xff] }
 0x13e   :  { %1387 = vmatpush3.bf16.msra.mxu1 %v1386_v42  ;;  %1419 = vmatpush3.bf16.msra.mxu0 %v1418_v1  ;;  %v1464_v42 = vpack.c.bf16 %v713_v32, %v712_v31  ;;  %v696_v1 = vld [vmem:[#allocation3 + $0x310] sm:$0xff]  ;;  %v690_v31 = vld [vmem:[#allocation3 + $0x2e0] sm:$0xff]  ;;  %v691_v32 = vld [vmem:[#allocation3 + $0x2e8] sm:$0xff] }
 0x13f   :  { %1389 = vmatprep.subr.bf16.mxu1 %v1388_v44  ;;  %1421 = vmatprep.subr.bf16.mxu0 %v1420_v45  ;;  %v682_v44 = vld [vmem:[#allocation3 + $0x2a0] sm:$0xff]  ;;  %v683_v45 = vld [vmem:[#allocation3 + $0x2a8] sm:$0xff] }
 0x140   :  { %v1436_v52 = vpack.c.bf16 %v683_v45, %v682_v44  ;;  %v692_v44 = vld [vmem:[#allocation3 + $0x2f0] sm:$0xff]  ;;  %v288_v45 = vsub.s32 5, %v2029_v20 }
 0x142   :  { %1391 = vmatpush3.bf16.msra.mxu1 %v1390_v49  ;;  %1423 = vmatpush3.bf16.msra.mxu0 %v1422_v50  ;;  %v1466_v49 = vpack.c.bf16 %v697_v43, %v696_v1  ;;  %v666_v50 = vld [vmem:[#allocation3 + $0x220] sm:$0xff]  ;;  %v707_v43 = vld [vmem:[#allocation3 + $0x368] sm:$0xff] }
 0x143   :  { %1393 = vmatprep.subr.bf16.mxu1 %v1392_v54  ;;  %1425 = vmatprep.subr.bf16.mxu0 %v1424_v58  ;;  %v698_v54 = vld [vmem:[#allocation3 + $0x320] sm:$0xff]  ;;  %v716_v58 = vld [vmem:[#allocation3 + $0x3b0] sm:$0xff]  ;;  %v1438_v60 = vpack.c.bf16 %v667_v51, %v666_v50  ;;  %v285_v50 = vrot.slane %v2036_v10, %v284_v37 }
 0x144   :  { %v1470_v61 = vpack.c.bf16 %v699_v55, %v698_v54  ;;  %v706_v1 = vld [vmem:[#allocation3 + $0x360] sm:$0xff]  ;;  %v1456_v55 = vpack.c.bf16 %v693_v47, %v692_v44 }
 0x146   :  { %1395 = vmatpush3.bf16.msra.mxu1 %v1394_v59  ;;  %1427 = vmatpush3.bf16.msra.mxu0 %v1426_v62  ;;  %v717_v59 = vld [vmem:[#allocation3 + $0x3b8] sm:$0xff]  ;;  %v668_v62 = vld [vmem:[#allocation3 + $0x230] sm:$0xff] }
 0x147   :  { %1429 = vmatprep.subr.bf16.mxu1 %v1428_v4  ;;  %1461 = vmatprep.subr.bf16.mxu0 %v1460_v6  ;;  %v1472_v3 = vpack.c.bf16 %v717_v59, %v716_v58  ;;  %v700_v4 = vld [vmem:[#allocation3 + $0x330] sm:$0xff]  ;;  %v686_v6 = vld [vmem:[#allocation3 + $0x2c0] sm:$0xff]  ;;  %v1442_v11 = vpack.c.bf16 %v669_v63, %v668_v62  ;;  %v709_v59 = vld [vmem:[#allocation3 + $0x378] sm:$0xff] }
 0x148   :  { %v1474_v12 = vpack.c.bf16 %v701_v5, %v700_v4  ;;  %v708_v58 = vld [vmem:[#allocation3 + $0x370] sm:$0xff] }
 0x1dc   :  { %v372_v16 = vpop.f32.mrb[0].mxu1  ;;  %v443_v17 = vpop.f32.mrb[2].mxu0 }
 0x1dd   :  { %v373_v21 = vadd.f32 %v372_v16, %v269_v0  ;;  %v444_v22 = vadd.f32 %v443_v17, %v277_v13  ;;  %v374_v23 = vpop.f32.mrb[1].mxu1  ;;  %v445_v24 = vpop.f32.mrb[3].mxu0  ;;  %v670_v0 = vld [vmem:[#allocation3 + $0x240] sm:$0xff]  ;;  %v671_v13 = vld [vmem:[#allocation3 + $0x248] sm:$0xff] }
 0x1de   :  { %v375_v28 = vadd.f32 %v374_v23, %v273_v14  ;;  %v446_v29 = vadd.f32 %v445_v24, %v281_v15  ;;  %v1444_v14 = vpack.c.bf16 %v687_v7, %v686_v6  ;;  %v1476_v15 = vpack.c.bf16 %v719_v9, %v718_v8  ;;  %v702_v16 = vld [vmem:[#allocation3 + $0x340] sm:$0xff]  ;;  %v703_v17 = vld [vmem:[#allocation3 + $0x348] sm:$0xff] }
 0x1df   :  { %v590_v39 = vmax.f32 %v373_v21, 0.0  ;;  %v592_v40 = vmax.f32 %v444_v22, 0.0  ;;  %v720_v21 = vld [vmem:[#allocation3 + $0x3d0] sm:$0xff]  ;;  %v721_v22 = vld [vmem:[#allocation3 + $0x3d8] sm:$0xff]  ;;  %v1446_v23 = vpack.c.bf16 %v671_v13, %v670_v0  ;;  %v1478_v24 = vpack.c.bf16 %v703_v17, %v702_v16 }
 0x1e0   :  { %v591_v33 = vmax.f32 %v375_v28, 0.0  ;;  %v593_v34 = vmax.f32 %v446_v29, 0.0  ;;  %v1480_v28 = vpack.c.bf16 %v721_v22, %v720_v21  ;;  %v704_v29 = vld [vmem:[#allocation3 + $0x350] sm:$0xff] }
 0x1e2   :  { %797 = vmatprep.mubr.f32.mxu1 %v591_v33  ;;  %867 = vmatprep.mubr.f32.mxu0 %v593_v34  ;;  %v722_v33 = vld [vmem:[#allocation3 + $0x3e0] sm:$0xff]  ;;  %v723_v34 = vld [vmem:[#allocation3 + $0x3e8] sm:$0xff] }
 0x1e3   :  { %798 = vmatmul.mubr.f32.vlgmr.msra.gmra.mrb[4].mxu1 %v590_v39  ;;  %868 = vmatmul.mubr.f32.vlgmr.msra.gmra.mrb[6].mxu0 %v592_v40  ;;  %v675_v39 = vld [vmem:[#allocation3 + $0x268] sm:$0xff]  ;;  %v1452_v40 = vpack.c.bf16 %v691_v32, %v690_v31 }
 0x1e4   :  { %1431 = vmatpush3.bf16.msra.mxu1 %v1430_v35  ;;  %1463 = vmatpush3.bf16.msra.mxu0 %v1462_v36  ;;  %v1450_v35 = vpack.c.bf16 %v673_v26, %v672_v25  ;;  %v1482_v36 = vpack.c.bf16 %v705_v30, %v704_v29  ;;  %v1454_v51 = vpack.c.bf16 %v675_v39, %v674_v38 }
 0x1e5   :  { %1433 = vmatprep.subr.bf16.mxu1 %v1432_v41  ;;  %1465 = vmatprep.subr.bf16.mxu0 %v1464_v42  ;;  %v1484_v41 = vpack.c.bf16 %v723_v34, %v722_v33  ;;  %v292_v42 = vsub.s32 6, %v2029_v20  ;;  %v289_v20 = vrot.slane %v2036_v10, %v288_v45 }
 0x1e7   :  { %v293_v54 = vrot.slane %v2036_v10, %v292_v42 }
 0x1e8   :  { %1435 = vmatpush3.bf16.msra.mxu1 %v1434_v48  ;;  %1467 = vmatpush3.bf16.msra.mxu0 %v1466_v49  ;;  %v724_v48 = vld [vmem:[#allocation3 + $0x3f0] sm:$0xff]  ;;  %v725_v49 = vld [vmem:[#allocation3 + $0x3f8] sm:$0xff] }
 0x1e9   :  { %1437 = vmatprep.subr.bf16.mxu1 %v1436_v52  ;;  %1469 = vmatprep.subr.bf16.mxu0 %v1468_v53  ;;  %v1486_v52 = vpack.c.bf16 %v707_v43, %v706_v1  ;;  %v676_v53 = vld [vmem:[#allocation3 + $0x270] sm:$0xff]  ;;  %v1488_v56 = vpack.c.bf16 %v725_v49, %v724_v48 }
 0x1ea   :  { %v1458_v63 = vpack.c.bf16 %v677_v57, %v676_v53 }
 0x1ec   :  { %1439 = vmatpush3.bf16.msra.mxu1 %v1438_v60  ;;  %1471 = vmatpush3.bf16.msra.mxu0 %v1470_v61  ;;  %v297_v60 = vrot.slane %v2036_v10, %v296_v46 }
 0x1ed   :  { %1441 = vmatprep.subr.bf16.mxu1 %v1440_v2  ;;  %1473 = vmatprep.subr.bf16.mxu0 %v1472_v3  ;;  %v1490_v2 = vpack.c.bf16 %v709_v59, %v708_v58 }
 0x1f0   :  { %1443 = vmatpush3.bf16.msra.mxu1 %v1442_v11  ;;  %1475 = vmatpush3.bf16.msra.mxu0 %v1474_v12 }
 0x1f1   :  { %1445 = vmatprep.subr.bf16.mxu1 %v1444_v14  ;;  %1477 = vmatprep.subr.bf16.mxu0 %v1476_v15  ;;  %v1019_v14 = vld [vmem:[%s2063_s5] ss:$0 sm:$0xff] }
 0x1f4   :  { %1447 = vmatpush3.bf16.msra.mxu1 %v1446_v23  ;;  %1479 = vmatpush3.bf16.msra.mxu0 %v1478_v24 }
 0x1f5   :  { %1449 = vmatprep.subr.bf16.mxu1 %v1448_v27  ;;  %1481 = vmatprep.subr.bf16.mxu0 %v1480_v28 }
 0x1f8   :  { %1451 = vmatpush3.bf16.msra.mxu1 %v1450_v35  ;;  %1483 = vmatpush3.bf16.msra.mxu0 %v1482_v36 }
 0x1f9   :  { %1453 = vmatprep.subr.bf16.mxu1 %v1452_v40  ;;  %1485 = vmatprep.subr.bf16.mxu0 %v1484_v41 }
 0x1fc   :  { %v514_v61 = vpop.f32.mrb[2].mxu1  ;;  %v585_v62 = vpop.f32.mrb[4].mxu0  ;;  %1455 = vmatpush3.bf16.msra.mxu1 %v1454_v51  ;;  %1487 = vmatpush3.bf16.msra.mxu0 %v1486_v52 }
 0x1fd   :  { %v515_v3 = vadd.f32 %v514_v61, %v285_v50  ;;  %v586_v4 = vadd.f32 %v585_v62, %v293_v54  ;;  %v516_v5 = vpop.f32.mrb[3].mxu1  ;;  %v587_v6 = vpop.f32.mrb[5].mxu0  ;;  %1457 = vmatprep.subr.bf16.mxu1 %v1456_v55  ;;  %1489 = vmatprep.subr.bf16.mxu0 %v1488_v56 }
 0x1fe   :  { %v517_v7 = vadd.f32 %v516_v5, %v289_v20  ;;  %v588_v8 = vadd.f32 %v587_v6, %v297_v60 }
 0x1ff   :  { %v594_v12 = vmax.f32 %v515_v3, 0.0  ;;  %v596_v10 = vmax.f32 %v586_v4, 0.0 }
 0x200   :  { %v595_v9 = vmax.f32 %v517_v7, 0.0  ;;  %v597_v11 = vmax.f32 %v588_v8, 0.0  ;;  %1459 = vmatpush3.bf16.msra.mxu1 %v1458_v63  ;;  %1491 = vmatpush3.bf16.msra.mxu0 %v1490_v2 }
 0x202   :  { %937 = vmatprep.mubr.f32.mxu1 %v595_v9  ;;  %1007 = vmatprep.mubr.f32.mxu0 %v597_v11 }
 0x203   :  { %938 = vmatmul.mubr.f32.vlgmr.msra.gmra.mrb[6].mxu1 %v594_v12  ;;  %1008 = vmatmul.mubr.f32.vlgmr.msra.gmra.mrb[8].mxu0 %v596_v10 }
 0x2b6   :  { %v1069_v0 = vpop.f32.mrb[4].mxu1  ;;  %v1104_v13 = vpop.f32.mrb[6].mxu0 }
 0x2b7   :  { %v1070_v15 = vpop.f32.mrb[5].mxu1  ;;  %v1105_v16 = vpop.f32.mrb[7].mxu0 }
 0x2b8   :  { %v1071_v17 = vadd.f32 %v1070_v15, %v1069_v0  ;;  %v1106_v18 = vadd.f32 %v1105_v16, %v1104_v13 }
 0x2ba   :  { %v800_v19 = vadd.f32 %v1071_v17, %v1019_v14 }
 0x2bc   :  { %v870_v21 = vadd.f32 %v1106_v18, %v800_v19 }
 0x2d6   :  { %v1139_v22 = vpop.f32.mrb[6].mxu1  ;;  %v1174_v23 = vpop.f32.mrb[8].mxu0 }
 0x2d7   :  { %v1140_v24 = vpop.f32.mrb[7].mxu1  ;;  %v1175_v25 = vpop.f32.mrb[9].mxu0 }
 0x2d8   :  { %v1141_v26 = vadd.f32 %v1140_v24, %v1139_v22  ;;  %v1176_v27 = vadd.f32 %v1175_v25, %v1174_v23 }
 0x2da   :  { %v940_v28 = vadd.f32 %v1141_v26, %v870_v21 }
 0x2dc   :  { %v1010_v29 = vadd.f32 %v1176_v27, %v940_v28 }
 0x2de   :  { %1013 = vst [vmem:[%s2064_s6] sm:$0xff] %v1010_v29 }
 0x2df   :  { %1018 = vsyncpa [#allocation4], 1 }

// kernel: graph_conv_clf_forward.7
= control target key start
LH: loop header
LB: loop body
LE: loop exit
PB: predicated region body
PF: predicated region fallthrough
CT: control target
= control target key end

     0   :  { %v469_v3 = vmov 0.0   ;;  %s766_s1 = inlined_call_operand.vmem [shape: f32[128,256], index: 1, kind: input, shape index: {}]   ;;  %s767_s0 = inlined_call_operand.vmem [shape: f32[128,128], index: 0, kind: input, shape index: {}]   ;;  %s768_s2 = inlined_call_operand.vmem [shape: f32[1,256], index: 2, kind: input, shape index: {}]   ;;  %s769_s3 = inlined_call_operand.vmem [shape: f32[128,128], index: 3, kind: output, shape index: {0}]   ;;  %s770_s4 = inlined_call_operand.vmem [shape: bf16[128,128], index: 4, kind: output, shape index: {1}]  }
   0x1   :  { %v33_v0 = vld [vmem:[%s766_s1 + $0x8] sm:$0xff]  ;;  %v35_v1 = vld [vmem:[%s766_s1 + $0x18] sm:$0xff]  ;;  %v32_v2 = vld [vmem:[%s766_s1] sm:$0xff]  ;;  %140 = vmatprep.mubr.f32.mxu0 %v469_v3  ;;  %188 = vmatprep.mubr.f32.mxu1 %v469_v3 }
   0x2   :  { %v420_v4 = vpack.c.bf16 %v35_v1, %v33_v0  ;;  %v34_v5 = vld [vmem:[%s766_s1 + $0x10] sm:$0xff]  ;;  %v37_v6 = vld [vmem:[%s766_s1 + $0x28] sm:$0xff]  ;;  %v39_v7 = vld [vmem:[%s766_s1 + $0x38] sm:$0xff]  ;;  %v66_v1 = vlaneseq }
   0x3   :  { %v422_v8 = vpack.c.bf16 %v34_v5, %v32_v2  ;;  %v424_v9 = vpack.c.bf16 %v39_v7, %v37_v6  ;;  %v36_v10 = vld [vmem:[%s766_s1 + $0x20] sm:$0xff]  ;;  %v38_v11 = vld [vmem:[%s766_s1 + $0x30] sm:$0xff]  ;;  %v41_v12 = vld [vmem:[%s766_s1 + $0x48] sm:$0xff] }
   0x4   :  { %421 = vmatprep.subr.bf16.mxu0 %v420_v4  ;;  %452 = vmatprep.subr.bf16.mxu1 %v420_v4  ;;  %v43_v13 = vld [vmem:[%s766_s1 + $0x58] sm:$0xff]  ;;  %v426_v14 = vpack.c.bf16 %v38_v11, %v36_v10  ;;  %v40_v16 = vld [vmem:[%s766_s1 + $0x40] sm:$0xff]  ;;  %v42_v17 = vld [vmem:[%s766_s1 + $0x50] sm:$0xff]  ;;  %v67_v2 = vshrl.u32 %v66_v1, 7 }
   0x5   :  { %423 = vmatpush1.bf16.msra.mxu0 %v422_v8  ;;  %460 = vmatpush1.bf16.msra.mxu1 %v422_v8  ;;  %v428_v15 = vpack.c.bf16 %v43_v13, %v41_v12  ;;  %v45_v18 = vld [vmem:[%s766_s1 + $0x68] sm:$0xff]  ;;  %v47_v19 = vld [vmem:[%s766_s1 + $0x78] sm:$0xff]  ;;  %v430_v20 = vpack.c.bf16 %v42_v17, %v40_v16  ;;  %v44_v22 = vld [vmem:[%s766_s1 + $0x60] sm:$0xff] }
   0x6   :  { %425 = vmatprep.subr.bf16.mxu0 %v424_v9  ;;  %453 = vmatprep.subr.bf16.mxu1 %v424_v9  ;;  %v432_v21 = vpack.c.bf16 %v47_v19, %v45_v18  ;;  %v46_v23 = vld [vmem:[%s766_s1 + $0x70] sm:$0xff]  ;;  %v49_v24 = vld [vmem:[%s766_s1 + $0x88] sm:$0xff]  ;;  %v51_v25 = vld [vmem:[%s766_s1 + $0x98] sm:$0xff]  ;;  %v68_v4 = vsub.s32 0, %v67_v2 }
   0x7   :  { %v434_v26 = vpack.c.bf16 %v46_v23, %v44_v22  ;;  %v436_v27 = vpack.c.bf16 %v51_v25, %v49_v24  ;;  %v48_v28 = vld [vmem:[%s766_s1 + $0x80] sm:$0xff]  ;;  %v50_v29 = vld [vmem:[%s766_s1 + $0x90] sm:$0xff]  ;;  %v53_v30 = vld [vmem:[%s766_s1 + $0xa8] sm:$0xff] }
   0x8   :  { %v55_v31 = vld [vmem:[%s766_s1 + $0xb8] sm:$0xff]  ;;  %v438_v32 = vpack.c.bf16 %v50_v29, %v48_v28  ;;  %v52_v34 = vld [vmem:[%s766_s1 + $0xa0] sm:$0xff]  ;;  %v54_v35 = vld [vmem:[%s766_s1 + $0xb0] sm:$0xff] }
   0x9   :  { %427 = vmatpush1.bf16.msra.mxu0 %v426_v14  ;;  %461 = vmatpush1.bf16.msra.mxu1 %v426_v14  ;;  %v440_v33 = vpack.c.bf16 %v55_v31, %v53_v30  ;;  %v57_v36 = vld [vmem:[%s766_s1 + $0xc8] sm:$0xff]  ;;  %v59_v37 = vld [vmem:[%s766_s1 + $0xd8] sm:$0xff]  ;;  %v442_v38 = vpack.c.bf16 %v54_v35, %v52_v34  ;;  %v56_v40 = vld [vmem:[%s766_s1 + $0xc0] sm:$0xff] }
   0xa   :  { %429 = vmatprep.subr.bf16.mxu0 %v428_v15  ;;  %454 = vmatprep.subr.bf16.mxu1 %v428_v15  ;;  %v444_v39 = vpack.c.bf16 %v59_v37, %v57_v36  ;;  %v58_v41 = vld [vmem:[%s766_s1 + $0xd0] sm:$0xff]  ;;  %v61_v42 = vld [vmem:[%s766_s1 + $0xe8] sm:$0xff]  ;;  %v63_v43 = vld [vmem:[%s766_s1 + $0xf8] sm:$0xff] }
   0xb   :  { %v446_v44 = vpack.c.bf16 %v58_v41, %v56_v40  ;;  %v448_v45 = vpack.c.bf16 %v63_v43, %v61_v42  ;;  %v60_v46 = vld [vmem:[%s766_s1 + $0xe0] sm:$0xff]  ;;  %v62_v47 = vld [vmem:[%s766_s1 + $0xf0] sm:$0xff]  ;;  %v17_v51 = vld [vmem:[%s767_s0 + $0x8] sm:$0xff] }
   0xc   :  { %v450_v48 = vpack.c.bf16 %v62_v47, %v60_v46  ;;  %v16_v49 = vld [vmem:[%s767_s0] sm:$0xff]  ;;  %v25_v52 = vld [vmem:[%s767_s0 + $0x48] sm:$0xff]  ;;  %v18_v53 = vld [vmem:[%s767_s0 + $0x10] sm:$0xff] }
   0xd   :  { %431 = vmatpush1.bf16.msra.mxu0 %v430_v20  ;;  %462 = vmatpush1.bf16.msra.mxu1 %v430_v20  ;;  %v24_v50 = vld [vmem:[%s767_s0 + $0x40] sm:$0xff]  ;;  %v26_v54 = vld [vmem:[%s767_s0 + $0x50] sm:$0xff]  ;;  %v19_v55 = vld [vmem:[%s767_s0 + $0x18] sm:$0xff] }
   0xe   :  { %433 = vmatprep.subr.bf16.mxu0 %v432_v21  ;;  %455 = vmatprep.subr.bf16.mxu1 %v432_v21  ;;  %v27_v56 = vld [vmem:[%s767_s0 + $0x58] sm:$0xff]  ;;  %v20_v57 = vld [vmem:[%s767_s0 + $0x20] sm:$0xff]  ;;  %v21_v59 = vld [vmem:[%s767_s0 + $0x28] sm:$0xff] }
   0xf   :  { %v28_v58 = vld [vmem:[%s767_s0 + $0x60] sm:$0xff]  ;;  %v29_v60 = vld [vmem:[%s767_s0 + $0x68] sm:$0xff]  ;;  %v22_v61 = vld [vmem:[%s767_s0 + $0x30] sm:$0xff] }
  0x10   :  { %v30_v62 = vld [vmem:[%s767_s0 + $0x70] sm:$0xff]  ;;  %v23_v63 = vld [vmem:[%s767_s0 + $0x38] sm:$0xff]  ;;  %v64_v5 = vld [vmem:[%s768_s2] sm:$0x3] }
  0x11   :  { %435 = vmatpush1.bf16.msra.mxu0 %v434_v26  ;;  %463 = vmatpush1.bf16.msra.mxu1 %v434_v26  ;;  %v31_v0 = vld [vmem:[%s767_s0 + $0x78] sm:$0xff]  ;;  %v658_v6 = vrot.slane %v64_v5, %v68_v4 }
  0x12   :  { %437 = vmatprep.subr.bf16.mxu0 %v436_v27  ;;  %456 = vmatprep.subr.bf16.mxu1 %v436_v27 }
  0x15   :  { %439 = vmatpush1.bf16.msra.mxu0 %v438_v32  ;;  %464 = vmatpush1.bf16.msra.mxu1 %v438_v32 }
  0x16   :  { %441 = vmatprep.subr.bf16.mxu0 %v440_v33  ;;  %457 = vmatprep.subr.bf16.mxu1 %v440_v33 }
  0x19   :  { %443 = vmatpush1.bf16.msra.mxu0 %v442_v38  ;;  %465 = vmatpush1.bf16.msra.mxu1 %v442_v38 }
  0x1a   :  { %445 = vmatprep.subr.bf16.mxu0 %v444_v39  ;;  %458 = vmatprep.subr.bf16.mxu1 %v444_v39 }
  0x1d   :  { %447 = vmatpush1.bf16.msra.mxu0 %v446_v44  ;;  %466 = vmatpush1.bf16.msra.mxu1 %v446_v44 }
  0x1e   :  { %449 = vmatprep.subr.bf16.mxu0 %v448_v45  ;;  %459 = vmatprep.subr.bf16.mxu1 %v448_v45 }
  0x21   :  { %451 = vmatpush1.bf16.msra.mxu0 %v450_v48  ;;  %467 = vmatpush1.bf16.msra.mxu1 %v450_v48 }
  0x24   :  { %141 = vmatmul.mubr.f32.vlgmr.msra.gmra.mrb[0].mxu0 %v16_v49  ;;  %189 = vmatmul.mubr.f32.vlgmr.msra.gmra.mrb[0].mxu1 %v24_v50 }
  0x25   :  { %146 = vmatprep.mubr.f32.mxu0 %v469_v3  ;;  %194 = vmatprep.mubr.f32.mxu1 %v469_v3 }
  0x28   :  { %147 = vmatmul.mubr.f32.gmra.mrb[2].mxu0 %v17_v51  ;;  %195 = vmatmul.mubr.f32.gmra.mrb[2].mxu1 %v25_v52 }
  0x29   :  { %152 = vmatprep.mubr.f32.mxu0 %v469_v3  ;;  %200 = vmatprep.mubr.f32.mxu1 %v469_v3 }
  0x2c   :  { %153 = vmatmul.mubr.f32.gmra.mrb[4].mxu0 %v18_v53  ;;  %201 = vmatmul.mubr.f32.gmra.mrb[4].mxu1 %v26_v54 }
  0x2d   :  { %158 = vmatprep.mubr.f32.mxu0 %v469_v3  ;;  %206 = vmatprep.mubr.f32.mxu1 %v469_v3 }
  0x30   :  { %159 = vmatmul.mubr.f32.gmra.mrb[6].mxu0 %v19_v55  ;;  %207 = vmatmul.mubr.f32.gmra.mrb[6].mxu1 %v27_v56 }
  0x31   :  { %164 = vmatprep.mubr.f32.mxu0 %v469_v3  ;;  %212 = vmatprep.mubr.f32.mxu1 %v469_v3 }
  0x34   :  { %165 = vmatmul.mubr.f32.gmra.mrb[8].mxu0 %v20_v57  ;;  %213 = vmatmul.mubr.f32.gmra.mrb[8].mxu1 %v28_v58 }
  0x35   :  { %170 = vmatprep.mubr.f32.mxu0 %v469_v3  ;;  %218 = vmatprep.mubr.f32.mxu1 %v469_v3 }
  0x38   :  { %171 = vmatmul.mubr.f32.gmra.mrb[10].mxu0 %v21_v59  ;;  %219 = vmatmul.mubr.f32.gmra.mrb[10].mxu1 %v29_v60 }
  0x39   :  { %176 = vmatprep.mubr.f32.mxu0 %v469_v3  ;;  %224 = vmatprep.mubr.f32.mxu1 %v469_v3 }
  0x3c   :  { %177 = vmatmul.mubr.f32.gmra.mrb[12].mxu0 %v22_v61  ;;  %225 = vmatmul.mubr.f32.gmra.mrb[12].mxu1 %v30_v62 }
  0x3d   :  { %182 = vmatprep.mubr.f32.mxu0 %v469_v3  ;;  %230 = vmatprep.mubr.f32.mxu1 %v469_v3  ;;  %v72_v3 = vsub.s32 1, %v67_v2 }
  0x3f   :  { %v662_v13 = vrot.slane %v64_v5, %v72_v3 }
  0x40   :  { %183 = vmatmul.mubr.f32.gmra.mrb[14].mxu0 %v23_v63  ;;  %231 = vmatmul.mubr.f32.gmra.mrb[14].mxu1 %v31_v0 }
  0xf7   :  { %v142_v7 = vpop.f32.mrb[0].mxu0  ;;  %v190_v8 = vpop.f32.mrb[0].mxu1 }
  0xf8   :  { %v143_v9 = vadd.f32 %v142_v7, %v658_v6  ;;  %v191_v10 = vadd.f32 %v190_v8, %v658_v6  ;;  %v144_v11 = vpop.f32.mrb[1].mxu0  ;;  %v192_v12 = vpop.f32.mrb[1].mxu1 }
  0xf9   :  { %v145_v20 = vadd.f32 %v144_v11, %v662_v13  ;;  %v193_v21 = vadd.f32 %v192_v12, %v662_v13 }
  0xfa   :  { %237 = vst [vmem:[%s769_s3] sm:$0xff] %v143_v9  ;;  %245 = vst [vmem:[%s769_s3 + $0x40] sm:$0xff] %v191_v10 }
  0xfb   :  { %v148_v14 = vpop.f32.mrb[2].mxu0  ;;  %v196_v15 = vpop.f32.mrb[2].mxu1 }
  0xfc   :  { %v149_v16 = vadd.f32 %v148_v14, %v658_v6  ;;  %v197_v17 = vadd.f32 %v196_v15, %v658_v6  ;;  %v150_v18 = vpop.f32.mrb[3].mxu0  ;;  %v198_v19 = vpop.f32.mrb[3].mxu1 }
  0xfd   :  { %v151_v22 = vadd.f32 %v150_v18, %v662_v13  ;;  %v199_v23 = vadd.f32 %v198_v19, %v662_v13 }
  0xfe   :  { %238 = vst [vmem:[%s769_s3 + $0x8] sm:$0xff] %v149_v16  ;;  %246 = vst [vmem:[%s769_s3 + $0x48] sm:$0xff] %v197_v17 }
  0xff   :  { %v376_v24 = vpack.c.bf16 %v151_v22, %v145_v20  ;;  %v396_v25 = vpack.c.bf16 %v199_v23, %v193_v21  ;;  %v154_v26 = vpop.f32.mrb[4].mxu0  ;;  %v202_v27 = vpop.f32.mrb[4].mxu1 }
 0x100   :  { %v155_v28 = vadd.f32 %v154_v26, %v658_v6  ;;  %v203_v29 = vadd.f32 %v202_v27, %v658_v6  ;;  %v156_v30 = vpop.f32.mrb[5].mxu0  ;;  %v204_v31 = vpop.f32.mrb[5].mxu1 }
 0x101   :  { %377 = vst [vmem:[%s770_s4] sm:$0xff] %v376_v24   ;;  %416 = vst [vmem:[%s770_s4 + $0x20] sm:$0xff] %v396_v25   ;;  %v157_v38 = vadd.f32 %v156_v30, %v662_v13  ;;  %v205_v39 = vadd.f32 %v204_v31, %v662_v13 }
 0x102   :  { %239 = vst [vmem:[%s769_s3 + $0x10] sm:$0xff] %v155_v28  ;;  %247 = vst [vmem:[%s769_s3 + $0x50] sm:$0xff] %v203_v29 }
 0x103   :  { %v160_v32 = vpop.f32.mrb[6].mxu0  ;;  %v208_v33 = vpop.f32.mrb[6].mxu1 }
 0x104   :  { %v161_v34 = vadd.f32 %v160_v32, %v658_v6  ;;  %v209_v35 = vadd.f32 %v208_v33, %v658_v6  ;;  %v162_v36 = vpop.f32.mrb[7].mxu0  ;;  %v210_v37 = vpop.f32.mrb[7].mxu1 }
 0x105   :  { %v163_v40 = vadd.f32 %v162_v36, %v662_v13  ;;  %v211_v41 = vadd.f32 %v210_v37, %v662_v13 }
 0x106   :  { %240 = vst [vmem:[%s769_s3 + $0x18] sm:$0xff] %v161_v34  ;;  %248 = vst [vmem:[%s769_s3 + $0x58] sm:$0xff] %v209_v35 }
 0x107   :  { %v381_v42 = vpack.c.bf16 %v163_v40, %v157_v38  ;;  %v401_v43 = vpack.c.bf16 %v211_v41, %v205_v39  ;;  %v166_v44 = vpop.f32.mrb[8].mxu0  ;;  %v214_v45 = vpop.f32.mrb[8].mxu1 }
 0x108   :  { %v167_v46 = vadd.f32 %v166_v44, %v658_v6  ;;  %v215_v47 = vadd.f32 %v214_v45, %v658_v6  ;;  %v168_v48 = vpop.f32.mrb[9].mxu0  ;;  %v216_v49 = vpop.f32.mrb[9].mxu1 }
 0x109   :  { %413 = vst [vmem:[%s770_s4 + $0x8] sm:$0xff] %v381_v42   ;;  %417 = vst [vmem:[%s770_s4 + $0x28] sm:$0xff] %v401_v43   ;;  %v169_v56 = vadd.f32 %v168_v48, %v662_v13  ;;  %v217_v57 = vadd.f32 %v216_v49, %v662_v13 }
 0x10a   :  { %241 = vst [vmem:[%s769_s3 + $0x20] sm:$0xff] %v167_v46  ;;  %249 = vst [vmem:[%s769_s3 + $0x60] sm:$0xff] %v215_v47 }
 0x10b   :  { %v172_v50 = vpop.f32.mrb[10].mxu0  ;;  %v220_v51 = vpop.f32.mrb[10].mxu1 }
 0x10c   :  { %v173_v52 = vadd.f32 %v172_v50, %v658_v6  ;;  %v221_v53 = vadd.f32 %v220_v51, %v658_v6  ;;  %v174_v54 = vpop.f32.mrb[11].mxu0  ;;  %v222_v55 = vpop.f32.mrb[11].mxu1 }
 0x10d   :  { %v175_v58 = vadd.f32 %v174_v54, %v662_v13  ;;  %v223_v59 = vadd.f32 %v222_v55, %v662_v13 }
 0x10e   :  { %242 = vst [vmem:[%s769_s3 + $0x28] sm:$0xff] %v173_v52  ;;  %250 = vst [vmem:[%s769_s3 + $0x68] sm:$0xff] %v221_v53 }
 0x10f   :  { %v386_v60 = vpack.c.bf16 %v175_v58, %v169_v56  ;;  %v406_v61 = vpack.c.bf16 %v223_v59, %v217_v57  ;;  %v178_v62 = vpop.f32.mrb[12].mxu0  ;;  %v226_v63 = vpop.f32.mrb[12].mxu1 }
 0x110   :  { %v179_v0 = vadd.f32 %v178_v62, %v658_v6  ;;  %v227_v1 = vadd.f32 %v226_v63, %v658_v6  ;;  %v180_v2 = vpop.f32.mrb[13].mxu0  ;;  %v228_v4 = vpop.f32.mrb[13].mxu1 }
 0x111   :  { %414 = vst [vmem:[%s770_s4 + $0x10] sm:$0xff] %v386_v60   ;;  %418 = vst [vmem:[%s770_s4 + $0x30] sm:$0xff] %v406_v61   ;;  %v181_v11 = vadd.f32 %v180_v2, %v662_v13  ;;  %v229_v12 = vadd.f32 %v228_v4, %v662_v13 }
 0x112   :  { %243 = vst [vmem:[%s769_s3 + $0x30] sm:$0xff] %v179_v0  ;;  %251 = vst [vmem:[%s769_s3 + $0x70] sm:$0xff] %v227_v1 }
 0x113   :  { %v184_v5 = vpop.f32.mrb[14].mxu0  ;;  %v232_v3 = vpop.f32.mrb[14].mxu1 }
 0x114   :  { %v185_v7 = vadd.f32 %v184_v5, %v658_v6  ;;  %v233_v8 = vadd.f32 %v232_v3, %v658_v6  ;;  %v186_v9 = vpop.f32.mrb[15].mxu0  ;;  %v234_v10 = vpop.f32.mrb[15].mxu1 }
 0x115   :  { %v187_v14 = vadd.f32 %v186_v9, %v662_v13  ;;  %v235_v15 = vadd.f32 %v234_v10, %v662_v13 }
 0x116   :  { %244 = vst [vmem:[%s769_s3 + $0x38] sm:$0xff] %v185_v7  ;;  %252 = vst [vmem:[%s769_s3 + $0x78] sm:$0xff] %v233_v8 }
 0x117   :  { %v391_v16 = vpack.c.bf16 %v187_v14, %v181_v11  ;;  %v411_v6 = vpack.c.bf16 %v235_v15, %v229_v12 }
 0x119   :  { %415 = vst [vmem:[%s770_s4 + $0x18] sm:$0xff] %v391_v16   ;;  %419 = vst [vmem:[%s770_s4 + $0x38] sm:$0xff] %v411_v6  }

</bundles_post_ra>
